<compile_context>
chip_gen: v6e
topology: v6e:2x2x1
jax: 0.10.0
libtpu: 0.0.40
codegen_flags: <defaults>
</compile_context>

<pallas_src>
import jax
import jax.numpy as jnp
from jax.experimental import pallas as pl
from jax.experimental.pallas import tpu as pltpu


# ---------------------------------------------------------------------------
# Kernel
# ---------------------------------------------------------------------------
def _gcn_kernel(x_ref, b_ref, w_ref, bias_ref, o_ref, h_ref):
    # x_ref   : (bg, C, Vp)       bf16   diffusion layout (nodes on lanes)
    # b_ref   : (Vp, Kd*Vp)       bf16   [A_s^k] concatenated column-wise
    # w_ref   : (c_out, K*C)      bf16   1x1-conv weight, concat-block-major
    # bias_ref: (c_out, 1)        f32
    # o_ref   : (c_out, bg*Vp)    f32    lanes = (g, v)  -> lane-dense stores
    # h_ref   : (K*C, bg*Vp)      scratch: stacked concat features
    bg, c_in, vp = x_ref.shape
    kd = b_ref.shape[1] // vp          # = order * support_len

    def to_channel_major(blk_f32):
        # (bg*C, Vp) rows=(g,c), lanes=v  ->  (C, bg*Vp) rows=c, lanes=(g,v).
        # Only leading-dim reshapes (layout-free) and last-two-dim swaps /
        # rank-2 transposes (native Mosaic/XLU lowerings) are used.
        t = blk_f32.reshape(bg, c_in, vp)
        t = jnp.swapaxes(t, 1, 2)              # (bg, Vp, C)   last-two swap
        t = t.reshape(bg * vp, c_in)           # free leading-dim merge
        return t.T                             # (C, bg*Vp)    rank-2 transpose

    x2d = x_ref[...].reshape(bg * c_in, vp)    # free: collapse (g, c) rows

    # concat block 0: identity features.
    h_ref[0:c_in, :] = to_channel_major(
        x2d.astype(jnp.float32)).astype(h_ref.dtype)

    # All graph propagations at once: one fat MXU matmul against the
    # precomputed, column-concatenated adjacency powers (no serial chain).
    z = jnp.dot(x2d, b_ref[...], preferred_element_type=jnp.float32)
    for j in range(kd):                        # static, small (order*S)
        zj = z[:, j * vp:(j + 1) * vp]         # 128-aligned lane slice
        h_ref[(j + 1) * c_in:(j + 2) * c_in, :] = (
            to_channel_major(zj).astype(h_ref.dtype))

    # Channel-mixing 1x1 conv: ONE (c_out, K*C) @ (K*C, bg*Vp) matmul + bias.
    out = jnp.dot(w_ref[...], h_ref[...], preferred_element_type=jnp.float32)
    # TODO(synk): F.dropout is identity in eval mode; no stochastic dropout.
    o_ref[...] = (out + bias_ref[...]).astype(o_ref.dtype)


# ---------------------------------------------------------------------------
# block_g selection (VMEM-budget aware; v7x has only 64 MiB physical VMEM)
# ---------------------------------------------------------------------------
def _vmem_bytes_per_g(c_in, c_out, vp, k_blocks):
    kd = k_blocks - 1
    return vp * (2 * 2 * c_in          # x slab, bf16, double-buffered
                 + 2 * 4 * c_out       # out slab, f32, double-buffered
                 + 2 * k_blocks * c_in  # H scratch, bf16
                 + 4 * kd * c_in)      # diffusion intermediate, f32


def _choose_block_g(G, per_unit_bytes,
                    vmem_budget_bytes=24 * 1024 * 1024, min_steps=4):
    cap = max(8, int(vmem_budget_bytes // per_unit_bytes) // 8 * 8)
    target = -(-G // min_steps)                 # ceil(G / min_steps)
    target = max(8, -(-target // 8) * 8)        # round up to multiple of 8
    g_cap = max(8, -(-G // 8) * 8)
    bg = min(cap, target, g_cap)
    num_steps = -(-G // bg)
    if num_steps > 1 and num_steps % 2:
        num_steps += 1                          # even #steps for dual-TC (v7x)
    return bg, num_steps


# ---------------------------------------------------------------------------
# Wrapper
# ---------------------------------------------------------------------------
def gcn_forward(x, supports, weight, bias, *, order=2,
                compute_dtype=jnp.bfloat16, block_g=None):
    """Fused gcn forward.

    x       : (N, C, V, L) float32
    supports: list of (V, V) float32 adjacency / transition matrices
    weight  : (c_out, K*C) float32, K = order*len(supports)+1  (squeezed 1x1
              Conv2d weight; columns ordered block-major matching torch.cat)
    bias    : (c_out,) float32
    returns : (N, c_out, V, L) float32
    """
    N, C, V, L = x.shape
    S = len(supports)
    assert S >= 1
    K = order * S + 1
    Kd = K - 1
    c_out = weight.shape[0]
    assert weight.shape[1] == K * C, "weight must be (c_out, (order*S+1)*C)"

    Vp = ((V + 127) // 128) * 128              # lane-dense node axis
    G = N * L

    per_unit = _vmem_bytes_per_g(C, c_out, Vp, K)
    if block_g is None:
        bg, num_steps = _choose_block_g(G, per_unit)
    else:
        bg = block_g
        num_steps = -(-G // bg)
    G_pad = bg * num_steps

    # --- layout / dtype prep (cheap, one-time XLA ops) ----------------------
    # (N, C, V, L) -> (G, C, V): nodes land on lanes; zero-pad nodes & rows.
    xp = jnp.transpose(x, (0, 3, 1, 2)).reshape(G, C, V)
    xp = jnp.pad(xp, ((0, G_pad - G), (0, 0), (0, Vp - V)))
    xp = xp.astype(compute_dtype)

    # Precompute adjacency powers A_s^1..A_s^order, pad, concat column-wise.
    pows = []
    for a in supports:
        ak = a.astype(jnp.float32)
        for _ in range(order):
            pows.append(jnp.pad(ak, ((0, Vp - V), (0, Vp - V))))
            ak = jnp.matmul(ak, a.astype(jnp.float32),
                            precision=jax.lax.Precision.HIGHEST)
    bmat = jnp.concatenate(pows, axis=1).astype(compute_dtype)   # (Vp, Kd*Vp)

    w2 = weight.astype(compute_dtype)                            # (c_out, K*C)
    b2 = bias.reshape(c_out, 1).astype(jnp.float32)

    const_bytes = 2 * (bmat.size * 2 + w2.size * 2 + b2.size * 4)
    need = per_unit * bg + const_bytes
    vmem_limit = int(min(56 * 2**20, max(32 * 2**20, int(need * 1.5))))

    flops = (2 * G_pad * C * Vp * (Kd * Vp)           # diffusion matmul
             + 2 * G_pad * K * C * c_out * Vp)        # channel mix matmul
    bytes_accessed = (xp.size * 2 + c_out * G_pad * Vp * 4
                      + bmat.size * 2 + w2.size * 2 + b2.size * 4)

    out2 = pl.pallas_call(
        _gcn_kernel,
        out_shape=jax.ShapeDtypeStruct((c_out, G_pad * Vp), jnp.float32),
        grid_spec=pltpu.PrefetchScalarGridSpec(
            num_scalar_prefetch=0,
            grid=(num_steps,),
            in_specs=[
                pl.BlockSpec((bg, C, Vp), lambda g: (g, 0, 0)),
                pl.BlockSpec((Vp, Kd * Vp), lambda g: (0, 0)),
                pl.BlockSpec((c_out, K * C), lambda g: (0, 0)),
                pl.BlockSpec((c_out, 1), lambda g: (0, 0)),
            ],
            out_specs=pl.BlockSpec((c_out, bg * Vp), lambda g: (0, g)),
            scratch_shapes=[pltpu.VMEM((K * C, bg * Vp), compute_dtype)],
        ),
        compiler_params=pltpu.CompilerParams(
            dimension_semantics=("parallel",),
            vmem_limit_bytes=vmem_limit,
        ),
        cost_estimate=pl.CostEstimate(
            flops=flops, transcendentals=0, bytes_accessed=bytes_accessed),
    )(xp, bmat, w2, b2)

    # (c_out, G_pad*Vp) -> drop padding -> (N, c_out, V, L)
    out = out2.reshape(c_out, G_pad, Vp)[:, :G, :V]
    out = out.reshape(c_out, N, L, V).transpose(1, 0, 3, 2)
    return out


# ---------------------------------------------------------------------------
# Pure-JAX reference (f32, HIGHEST precision) for correctness checking
# ---------------------------------------------------------------------------
def _reference(x, supports, weight, bias, order):
    outs = [x]
    for a in supports:
        x1 = jnp.einsum('ncvl,vw->ncwl', x, a,
                        precision=jax.lax.Precision.HIGHEST)
        outs.append(x1)
        for _ in range(2, order + 1):
            x2 = jnp.einsum('ncvl,vw->ncwl', x1, a,
                            precision=jax.lax.Precision.HIGHEST)
            outs.append(x2)
            x1 = x2
    h = jnp.concatenate(outs, axis=1)
    h = jnp.einsum('ncvl,oc->novl', h, weight,
                   precision=jax.lax.Precision.HIGHEST)
    return h + bias[None, :, None, None]


if __name__ == "__main__":
    key = jax.random.PRNGKey(0)
    k_x, k_a, k_w, k_b = jax.random.split(key, 4)

    # small shapes consistent with the module: (batch, c_in, nodes, seq)
    N, C_in, V, L = 2, 8, 16, 8
    support_len, order = 3, 2
    c_out = 16
    K = order * support_len + 1

    x = jax.random.normal(k_x, (N, C_in, V, L), jnp.float32)

    supports = []
    for ak in jax.random.split(k_a, support_len):
        a_raw = jax.random.uniform(ak, (V, V), jnp.float32)
        supports.append(a_raw / jnp.sum(a_raw, axis=1, keepdims=True))

    weight = 0.1 * jax.random.normal(k_w, (c_out, K * C_in), jnp.float32)
    bias = 0.1 * jax.random.normal(k_b, (c_out,), jnp.float32)

    out = gcn_forward(x, supports, weight, bias, order=order)
    out = jax.block_until_ready(out)

    ref = _reference(x, supports, weight, bias, order)
    assert out.shape == (N, c_out, V, L)
    max_err = float(jnp.max(jnp.abs(out - ref)))
    # bf16 inputs / bf16 stacked features with f32 accumulation vs. an f32
    # HIGHEST-precision reference: allow ~1% absolute error headroom.
    assert max_err < 3e-2, max_err

    print("KERNEL_OK")
</pallas_src>

<mosaic_0001>
module attributes {stable_mosaic.version = 11 : i64} {
  func.func @_gcn_kernel(%arg0: i32, %arg1: memref<8x8x128xbf16, #tpu.memory_space<vmem>>, %arg2: memref<128x768xbf16, #tpu.memory_space<vmem>>, %arg3: memref<16x56xbf16, #tpu.memory_space<vmem>>, %arg4: memref<16x1xf32, #tpu.memory_space<vmem>>, %arg5: memref<16x1024xf32, #tpu.memory_space<vmem>>, %arg6: memref<56x1024xbf16, #tpu.memory_space<vmem>>) attributes {dimension_semantics = [#tpu.dimension_semantics<parallel>], iteration_bounds = array<i64: 2>, scalar_prefetch = 0 : i64, scratch_operands = 1 : i64, tpu.core_type = #tpu.core_type<tc>, window_params = [{transform_indices = @transform_0, window_bounds = array<i64: 8, 8, 128>}, {pipeline_mode = #tpu.pipeline_mode<synchronous>, transform_indices = @transform_1, window_bounds = array<i64: 128, 768>}, {pipeline_mode = #tpu.pipeline_mode<synchronous>, transform_indices = @transform_2, window_bounds = array<i64: 16, 56>}, {pipeline_mode = #tpu.pipeline_mode<synchronous>, transform_indices = @transform_3, window_bounds = array<i64: 16, 1>}, {transform_indices = @transform_4, window_bounds = array<i64: 16, 1024>}]} {
    %c0 = arith.constant 0 : index
    %c0_0 = arith.constant 0 : index
    %c0_1 = arith.constant 0 : index
    %0 = vector.load %arg1[%c0, %c0_0, %c0_1] : memref<8x8x128xbf16, #tpu.memory_space<vmem>>, vector<8x8x128xbf16>
    %1 = vector.shape_cast %0 : vector<8x8x128xbf16> to vector<64x128xbf16>
    %2 = arith.extf %1 : vector<64x128xbf16> to vector<64x128xf32>
    %3 = vector.shape_cast %2 : vector<64x128xf32> to vector<8x8x128xf32>
    %4 = tpu.transpose %3, [0, 2, 1] : vector<8x8x128xf32> -> vector<8x128x8xf32>
    %5 = vector.shape_cast %4 : vector<8x128x8xf32> to vector<1024x8xf32>
    %6 = tpu.transpose %5, [1, 0] : vector<1024x8xf32> -> vector<8x1024xf32>
    %7 = arith.truncf %6 : vector<8x1024xf32> to vector<8x1024xbf16>
    %c0_2 = arith.constant 0 : index
    %c0_3 = arith.constant 0 : index
    %8 = vector.load %arg6[%c0_2, %c0_3] : memref<56x1024xbf16, #tpu.memory_space<vmem>>, vector<8x1024xbf16>
    tpu.vector_store %arg6[%c0_2, %c0_3], %7 {strides = array<i32>} : memref<56x1024xbf16, #tpu.memory_space<vmem>>, vector<8x1024xbf16>,
    %c0_4 = arith.constant 0 : index
    %c0_5 = arith.constant 0 : index
    %9 = vector.load %arg2[%c0_4, %c0_5] : memref<128x768xbf16, #tpu.memory_space<vmem>>, vector<128x768xbf16>
    %cst = arith.constant dense<0.000000e+00> : vector<64x768xf32>
    %10 = tpu.matmul %1, %9, %cst {dimension_numbers = #tpu.dot_dimension_numbers<[1], [0], [0], [1], [0, 0, 1, 1], [], []>} : vector<64x128xbf16>, vector<128x768xbf16>, vector<64x768xf32> -> vector<64x768xf32>
    %11 = vector.extract_strided_slice %10 {offsets = [0, 0], sizes = [64, 128], strides = [1, 1]} : vector<64x768xf32> to vector<64x128xf32>
    %12 = vector.shape_cast %11 : vector<64x128xf32> to vector<8x8x128xf32>
    %13 = tpu.transpose %12, [0, 2, 1] : vector<8x8x128xf32> -> vector<8x128x8xf32>
    %14 = vector.shape_cast %13 : vector<8x128x8xf32> to vector<1024x8xf32>
    %15 = tpu.transpose %14, [1, 0] : vector<1024x8xf32> -> vector<8x1024xf32>
    %16 = arith.truncf %15 : vector<8x1024xf32> to vector<8x1024xbf16>
    %c8 = arith.constant 8 : index
    %c0_6 = arith.constant 0 : index
    %17 = vector.load %arg6[%c8, %c0_6] : memref<56x1024xbf16, #tpu.memory_space<vmem>>, vector<8x1024xbf16>
    tpu.vector_store %arg6[%c8, %c0_6], %16 {strides = array<i32>} : memref<56x1024xbf16, #tpu.memory_space<vmem>>, vector<8x1024xbf16>,
    %18 = vector.extract_strided_slice %10 {offsets = [0, 128], sizes = [64, 128], strides = [1, 1]} : vector<64x768xf32> to vector<64x128xf32>
    %19 = vector.shape_cast %18 : vector<64x128xf32> to vector<8x8x128xf32>
    %20 = tpu.transpose %19, [0, 2, 1] : vector<8x8x128xf32> -> vector<8x128x8xf32>
    %21 = vector.shape_cast %20 : vector<8x128x8xf32> to vector<1024x8xf32>
    %22 = tpu.transpose %21, [1, 0] : vector<1024x8xf32> -> vector<8x1024xf32>
    %23 = arith.truncf %22 : vector<8x1024xf32> to vector<8x1024xbf16>
    %c16 = arith.constant 16 : index
    %c0_7 = arith.constant 0 : index
    %24 = vector.load %arg6[%c16, %c0_7] : memref<56x1024xbf16, #tpu.memory_space<vmem>>, vector<8x1024xbf16>
    tpu.vector_store %arg6[%c16, %c0_7], %23 {strides = array<i32>} : memref<56x1024xbf16, #tpu.memory_space<vmem>>, vector<8x1024xbf16>,
    %25 = vector.extract_strided_slice %10 {offsets = [0, 256], sizes = [64, 128], strides = [1, 1]} : vector<64x768xf32> to vector<64x128xf32>
    %26 = vector.shape_cast %25 : vector<64x128xf32> to vector<8x8x128xf32>
    %27 = tpu.transpose %26, [0, 2, 1] : vector<8x8x128xf32> -> vector<8x128x8xf32>
    %28 = vector.shape_cast %27 : vector<8x128x8xf32> to vector<1024x8xf32>
    %29 = tpu.transpose %28, [1, 0] : vector<1024x8xf32> -> vector<8x1024xf32>
    %30 = arith.truncf %29 : vector<8x1024xf32> to vector<8x1024xbf16>
    %c24 = arith.constant 24 : index
    %c0_8 = arith.constant 0 : index
    %31 = vector.load %arg6[%c24, %c0_8] : memref<56x1024xbf16, #tpu.memory_space<vmem>>, vector<8x1024xbf16>
    tpu.vector_store %arg6[%c24, %c0_8], %30 {strides = array<i32>} : memref<56x1024xbf16, #tpu.memory_space<vmem>>, vector<8x1024xbf16>,
    %32 = vector.extract_strided_slice %10 {offsets = [0, 384], sizes = [64, 128], strides = [1, 1]} : vector<64x768xf32> to vector<64x128xf32>
    %33 = vector.shape_cast %32 : vector<64x128xf32> to vector<8x8x128xf32>
    %34 = tpu.transpose %33, [0, 2, 1] : vector<8x8x128xf32> -> vector<8x128x8xf32>
    %35 = vector.shape_cast %34 : vector<8x128x8xf32> to vector<1024x8xf32>
    %36 = tpu.transpose %35, [1, 0] : vector<1024x8xf32> -> vector<8x1024xf32>
    %37 = arith.truncf %36 : vector<8x1024xf32> to vector<8x1024xbf16>
    %c32 = arith.constant 32 : index
    %c0_9 = arith.constant 0 : index
    %38 = vector.load %arg6[%c32, %c0_9] : memref<56x1024xbf16, #tpu.memory_space<vmem>>, vector<8x1024xbf16>
    tpu.vector_store %arg6[%c32, %c0_9], %37 {strides = array<i32>} : memref<56x1024xbf16, #tpu.memory_space<vmem>>, vector<8x1024xbf16>,
    %39 = vector.extract_strided_slice %10 {offsets = [0, 512], sizes = [64, 128], strides = [1, 1]} : vector<64x768xf32> to vector<64x128xf32>
    %40 = vector.shape_cast %39 : vector<64x128xf32> to vector<8x8x128xf32>
    %41 = tpu.transpose %40, [0, 2, 1] : vector<8x8x128xf32> -> vector<8x128x8xf32>
    %42 = vector.shape_cast %41 : vector<8x128x8xf32> to vector<1024x8xf32>
    %43 = tpu.transpose %42, [1, 0] : vector<1024x8xf32> -> vector<8x1024xf32>
    %44 = arith.truncf %43 : vector<8x1024xf32> to vector<8x1024xbf16>
    %c40 = arith.constant 40 : index
    %c0_10 = arith.constant 0 : index
    %45 = vector.load %arg6[%c40, %c0_10] : memref<56x1024xbf16, #tpu.memory_space<vmem>>, vector<8x1024xbf16>
    tpu.vector_store %arg6[%c40, %c0_10], %44 {strides = array<i32>} : memref<56x1024xbf16, #tpu.memory_space<vmem>>, vector<8x1024xbf16>,
    %46 = vector.extract_strided_slice %10 {offsets = [0, 640], sizes = [64, 128], strides = [1, 1]} : vector<64x768xf32> to vector<64x128xf32>
    %47 = vector.shape_cast %46 : vector<64x128xf32> to vector<8x8x128xf32>
    %48 = tpu.transpose %47, [0, 2, 1] : vector<8x8x128xf32> -> vector<8x128x8xf32>
    %49 = vector.shape_cast %48 : vector<8x128x8xf32> to vector<1024x8xf32>
    %50 = tpu.transpose %49, [1, 0] : vector<1024x8xf32> -> vector<8x1024xf32>
    %51 = arith.truncf %50 : vector<8x1024xf32> to vector<8x1024xbf16>
    %c48 = arith.constant 48 : index
    %c0_11 = arith.constant 0 : index
    %52 = vector.load %arg6[%c48, %c0_11] : memref<56x1024xbf16, #tpu.memory_space<vmem>>, vector<8x1024xbf16>
    tpu.vector_store %arg6[%c48, %c0_11], %51 {strides = array<i32>} : memref<56x1024xbf16, #tpu.memory_space<vmem>>, vector<8x1024xbf16>,
    %c0_12 = arith.constant 0 : index
    %c0_13 = arith.constant 0 : index
    %53 = vector.load %arg3[%c0_12, %c0_13] : memref<16x56xbf16, #tpu.memory_space<vmem>>, vector<16x56xbf16>
    %c0_14 = arith.constant 0 : index
    %c0_15 = arith.constant 0 : index
    %54 = vector.load %arg6[%c0_14, %c0_15] : memref<56x1024xbf16, #tpu.memory_space<vmem>>, vector<56x1024xbf16>
    %cst_16 = arith.constant dense<0.000000e+00> : vector<16x1024xf32>
    %55 = tpu.matmul %53, %54, %cst_16 {dimension_numbers = #tpu.dot_dimension_numbers<[1], [0], [0], [1], [0, 0, 1, 1], [], []>} : vector<16x56xbf16>, vector<56x1024xbf16>, vector<16x1024xf32> -> vector<16x1024xf32>
    %c0_17 = arith.constant 0 : index
    %c0_18 = arith.constant 0 : index
    %56 = vector.load %arg4[%c0_17, %c0_18] : memref<16x1xf32, #tpu.memory_space<vmem>>, vector<16x1xf32>
    %57 = vector.broadcast %56 : vector<16x1xf32> to vector<16x1024xf32>
    %58 = arith.addf %55, %57 : vector<16x1024xf32>
    %c0_19 = arith.constant 0 : index
    %c0_20 = arith.constant 0 : index
    %59 = vector.load %arg5[%c0_19, %c0_20] : memref<16x1024xf32, #tpu.memory_space<vmem>>, vector<16x1024xf32>
    tpu.vector_store %arg5[%c0_19, %c0_20], %58 {strides = array<i32>} : memref<16x1024xf32, #tpu.memory_space<vmem>>, vector<16x1024xf32>,
    return
  }
  func.func @transform_0(%arg0: i32) -> (i32, i32, i32) {
    %c0_i32 = arith.constant 0 : i32
    %c0_i32_0 = arith.constant 0 : i32
    %c0_i32_1 = arith.constant 0 : i32
    return %arg0, %c0_i32, %c0_i32_0 : i32, i32, i32
  }
  func.func @transform_1(%arg0: i32) -> (i32, i32) {
    %c0_i32 = arith.constant 0 : i32
    %c0_i32_0 = arith.constant 0 : i32
    %c0_i32_1 = arith.constant 0 : i32
    return %c0_i32, %c0_i32_0 : i32, i32
  }
  func.func @transform_2(%arg0: i32) -> (i32, i32) {
    %c0_i32 = arith.constant 0 : i32
    %c0_i32_0 = arith.constant 0 : i32
    %c0_i32_1 = arith.constant 0 : i32
    return %c0_i32, %c0_i32_0 : i32, i32
  }
  func.func @transform_3(%arg0: i32) -> (i32, i32) {
    %c0_i32 = arith.constant 0 : i32
    %c0_i32_0 = arith.constant 0 : i32
    %c0_i32_1 = arith.constant 0 : i32
    return %c0_i32, %c0_i32_0 : i32, i32
  }
  func.func @transform_4(%arg0: i32) -> (i32, i32) {
    %c0_i32 = arith.constant 0 : i32
    %c0_i32_0 = arith.constant 0 : i32
    return %c0_i32, %arg0 : i32, i32
  }
}

</mosaic_0001>

<bundles_post_ra>
// kernel: tpu_custom_call.1
= control target key start
LH: loop header
LB: loop body
LE: loop exit
PB: predicated region body
PF: predicated region fallthrough
CT: control target
= control target key end

     0   :  { %9 = vsyncpa [#allocation4], 0  ;;  %s9507_s0 = inlined_call_operand.hbm [shape: bf16[16,8,128], index: 0, kind: input, shape index: {}]   ;;  %s9508_s1 = inlined_call_operand.hbm [shape: bf16[128,768], index: 1, kind: input, shape index: {}]   ;;  %s9509_s2 = inlined_call_operand.vmem [shape: bf16[16,56], index: 2, kind: input, shape index: {}]   ;;  %s9510_s3 = inlined_call_operand.vmem [shape: f32[16,1], index: 3, kind: input, shape index: {}]   ;;  %s9511_s4 = inlined_call_operand.hbm [shape: f32[16,2048], index: 4, kind: output, shape index: {}]  }
   0x1   :  { %11 = vsyncpa [#allocation4 + $0x1], 0 }
   0x2   :  { %12 = vsyncpa [#allocation7], 0 }
   0x3   :  { %13 = vsyncpa [#allocation5], 0 }
   0x4   :  { %15 = vsyncpa [#allocation5 + $0x1], 0  ;;  %s8958_s15 = smov 0   ;;  %s8960_s16 = smov 0  }
   0x5   :  { %s8962_s17 = smov 0   ;;  %s8964_s18 = smov 0  }
   0x6 LB: > { %s8979_s19 = sadd.s32 4294967295, %s8920_s18   ;;  %s5118_s20 = sadd.s32 4294967294, %s8920_s18   ;;  %s8920_s18 = sphi %s8964_s18, %s9533_s18   ;;  %s8916_s17 = sphi %s8962_s17, %s9532_s17   ;;  %s8912_s16 = sphi %s8960_s16, %s9531_s16   ;;  %s8908_s15 = sphi %s8958_s15, %s9530_s15  }
   0x7   : > { %p41_p0 = scmp.ne.s32.totalorder %s8912_s16, %s8908_s15  ;;  %p9512_p1 = scmp.eq.s32.totalorder %s8979_s19, 0 }
   0x8   : > { %p134_p3 = scmp.eq.s32.totalorder %s5118_s20, 1  ;;  %p5119_p5 = scmp.ge.s32.totalorder %s8920_s18, 1 }
   0x9   : > { %p8988_p4 = por %p9512_p1, %p41_p0  ;;  %p141_p7 = scmp.lt.s32.totalorder %s8920_s18, 3 }
   0xa   : > { %p8993_p6 = por %p134_p3, %p41_p0  ;;  %s8922_s24 = smov [#allocation6]  }
   0xb   : > { %s9516_s21 = scalar_select %p8988_p4, 1, 0 }
   0xc   : > { %s9517_s22 = scalar_select %p8993_p6, 1, 0 }
   0xd   : > { %p8998_p8 = pnand %p5119_p5, %p141_p7  ;;  %s153_s25 = sshll.u32 %s8922_s24, 4  ;;  %s154_s25 = int_to_ptr.vmem [resolvable:$true] %s153_s25 }
   0xe   : > { %s9012_s27 = sadd.s32 1, %s8920_s18   ;;  %s28_s28 = sadd.s32 1, %s8916_s17 }
   0xf   : > { %s9518_s23 = scalar_select %p8998_p8, 1, 0 }
  0x10   : > { %p5325_p9 = pneg %p8998_p8  ;;  %s25_s29 = ssub.s32 %s8920_s18, %s9012_s27 }
  0x11   : > { %s8809_s30 = scalar_lea.vmem %s154_s25, 6144  ;;  %p8817_p5 = scmp.lt.s32.totalorder %s154_s25, %s154_s25 }
  0x12   : > { %p9007_p11 = pnand %p5325_p9, %p9512_p1  ;;  %p8810_p13 = scmp.ne.s32.totalorder %s154_s25, %s8809_s30 }
  0x13   : > { %p8818_p7 = scmp.lt.s32.totalorder %s8809_s30, %s8809_s30 }
  0x14   : > { %p8800_p12 = pneg %p9007_p11 }
  0x15   : > { %p8819_p10 = por %p8818_p7, %p8817_p5 }
  0x16   : > { %p8812_p0 = pnand %p8810_p13, %p8800_p12 }
  0x18   : > { %p8813_p3 = pneg %p8812_p0 }
  0x1a   : > { %p8820_p2 = pnand %p8819_p10, %p8813_p3 }
  0x1c   : > { %8823 = shalt.err (!%p8820_p2)
}
  0x1d   : > { %s8923_s5 = smov 384   ;;  %s8924_s6 = smov 24  }
  0x1e   : > { %5328 = dma.hbm_to_vmem [thread:$0]  (!%p9007_p11), %s9508_s1, 6144, %s154_s25, [#allocation7], %s8923_s5, %s8923_s5, %s8924_s6  }
  0x1f   : > { %p26_p9 = scmp.eq.s32.totalorder %s25_s29, 0  ;;  %p35_p12 = scmp.ne.s32.totalorder %s8916_s17, %s8912_s16 }
  0x20   : > { %p36_p10 = scmp.eq.s32.totalorder %s8920_s18, 0  ;;  %p5338_p2 = scmp.lt.s32.totalorder %s8920_s18, 2 }
  0x21   : > { %s9029_s9 = scalar_select %p26_p9, %s8916_s17, %s28_s28  }
  0x22   : > { %p37_p13 = por %p36_p10, %p35_p12  ;;  %p9520_p0 = scmp.eq.s32.totalorder %s8979_s19, 1 }
  0x23   : > { %s173_s11 = sand.u32 1, %s8916_s17   ;;  %s5255_s12 = sshll.u32 %s8920_s18, 9 }
  0x24   : > { %p9033_p3 = por %p9520_p0, %p35_p12  ;;  %s5122_s13 = sshll.u32 %s173_s11, 5 }
  0x25   : > { %s9042_s24 = scalar_lea.hbm %s9507_s0, %s5255_s12  ;;  %s177_s25 = scalar_lea.vmem [#allocation3], %s5122_s13 }
  0x26   : > { %s9521_s10 = scalar_select %p9033_p3, 1, 0 }
  0x27   : > { %s184_s26 = sshll.u32 %s177_s25, 4  ;;  %p9044_p11 = pnand %p5338_p2, %p37_p13  ;;  %s9048_s26 = int_to_ptr.vmem [resolvable:$true] %s184_s26 }
  0x28   : > { %s9050_s29 = scalar_lea.sflag [#allocation4], %s173_s11  ;;  %s8824_s30 = scalar_lea.hbm %s9042_s24, 512 }
  0x29   : > { %p8825_p5 = scmp.ne.s32.totalorder %s9042_s24, %s8824_s30  ;;  %p8826_p7 = pneg %p9044_p11 }
  0x2a   : > { %s8829_s7 = scalar_lea.hbm %s9507_s0, 1024  ;;  %p8830_p10 = scmp.lt.s32.totalorder %s9042_s24, %s9507_s0 }
  0x2b   : > { %p8827_p9 = pnand %p8826_p7, %p8825_p5  ;;  %p8831_p2 = scmp.lt.s32.totalorder %s8829_s7, %s8824_s30 }
  0x2d   : > { %p8828_p12 = pneg %p8827_p9  ;;  %p8832_p13 = por %p8831_p2, %p8830_p10 }
  0x2f   : > { %p8833_p0 = pnand %p8832_p13, %p8828_p12 }
  0x31   : > { %8836 = shalt.err (!%p8833_p0)
}
  0x32   : > { %s8837_s11 = scalar_lea.vmem %s9048_s26, 512  ;;  %s8925_s13 = smov [#allocation3]  }
  0x33   : > { %p8838_p1 = scmp.ne.s32.totalorder %s9048_s26, %s8837_s11  ;;  %s8842_s14 = sshll.u32 %s8925_s13, 4  ;;  %s8843_s14 = int_to_ptr.vmem [resolvable:$false] %s8842_s14 }
  0x34   : > { %s8844_s20 = scalar_lea.vmem %s8843_s14, 1024  ;;  %p8845_p9 = scmp.lt.s32.totalorder %s9048_s26, %s8843_s14 }
  0x35   : > { %p8840_p6 = pnand %p8838_p1, %p8826_p7  ;;  %p8846_p3 = scmp.lt.s32.totalorder %s8844_s20, %s8837_s11 }
  0x37   : > { %p8841_p5 = pneg %p8840_p6  ;;  %p8847_p4 = por %p8846_p3, %p8845_p9 }
  0x39   : > { %p8848_p8 = pnand %p8847_p4, %p8841_p5 }
  0x3b   : > { %8851 = shalt.err (!%p8848_p8)
}
  0x3c   : > { %s8926_s25 = smov 64   ;;  %s8927_s30 = smov 4  }
  0x3d   : > { %5332 = dma.hbm_to_vmem [thread:$0]  (!%p9044_p11), %s9042_s24, 512, %s9048_s26, %s9050_s29, %s8926_s25, %s8926_s25, %s8927_s30  }
  0x3e   : > { %p9523_p1 = scmp.ne.s32.totalorder %s9518_s23, 0 }
  0x3f   : > { %s9074_s5 = sand.u32 (!%p9523_p1), 1, %s8912_s16   ;;  %p9524_p4 = scmp.ne.s32.totalorder (!%p9523_p1), %s9516_s21, 0 }
  0x40   : > { %196 = sbr.rel (%p9523_p1) target bundleno = 2210 (0x8a2), region = 36  ;;  %s5126_s6 = sshll.u32 (!%p9523_p1), %s9074_s5, 5 }
  0x41   : > { %s199_s7 = scalar_lea.sflag (!%p9523_p1), [#allocation4], %s9074_s5  ;;  %s9078_s8 = scalar_lea.vmem (!%p9523_p1), [#allocation3], %s5126_s6 }
  0x45   : > { %8895 = dma.done.wait (%p9524_p4), %s199_s7, 512  }
  0x46   : > { %8897 = vsyncadd (%p9524_p4), %s199_s7, 4294966784  ;;  %p9525_p6 = scmp.eq.s32.totalorder %s8979_s19, 0 }
  0x48   : > { %8899 = dma.done.wait (%p9525_p6), [#allocation7], 6144   ;;  %p9526_p8 = pmov %p9525_p6 }
  0x49   : > { %v8928_v0 = vmov 0   ;;  %v9091_v1 = vld [vmem:[%s9078_s8] sm:$0xff]   ;;  %v8717_v4 = vld [vmem:[#allocation6 + $0x154] ss:$24 sps:$4 sm:$0xff]   ;;  %v8719_v5 = vld [vmem:[#allocation6 + $0x150] ss:$24 sps:$4 sm:$0xff]  }
  0x4a   : > { %8901 = vsyncadd (%p9526_p8), [#allocation7], 4294961152  ;;  %1142 = vmatprep.mubr.bf16.mxu0 %v8928_v0  ;;  %1215 = vmatprep.mubr.bf16.mxu1 %v8928_v0  ;;  %v242_v2 = vunpack.c.l.bf16 %v9091_v1  ;;  %v243_v3 = vunpack.c.h.bf16 %v9091_v1  ;;  %v8720_v6 = vld [vmem:[#allocation6 + $0x124] ss:$24 sps:$4 sm:$0xff]   ;;  %v8722_v8 = vld [vmem:[#allocation6 + $0x120] ss:$24 sps:$4 sm:$0xff]  }
  0x4b   : > { %1110 = vmatprep.subr.bf16.mxu0 %v8717_v4  ;;  %v8723_v9 = vld [vmem:[#allocation6 + $0xf4] ss:$24 sps:$4 sm:$0xff]   ;;  %v8725_v10 = vld [vmem:[#allocation6 + $0xf0] ss:$24 sps:$4 sm:$0xff]   ;;  %v8726_v11 = vld [vmem:[#allocation6 + $0xc4] ss:$24 sps:$4 sm:$0xff]  }
  0x4c   : > { %v5383_v7 = vpack.i.bf16 %v243_v3, %v242_v2  ;;  %1111 = vmatpush1.bf16.msra.mxu0 %v8719_v5  ;;  %v8728_v12 = vld [vmem:[#allocation6 + $0xc0] ss:$24 sps:$4 sm:$0xff]   ;;  %v8729_v13 = vld [vmem:[#allocation6 + $0x94] ss:$24 sps:$4 sm:$0xff]   ;;  %v8731_v17 = vld [vmem:[#allocation6 + $0x90] ss:$24 sps:$4 sm:$0xff]  }
  0x4d   : > { %1112 = vmatprep.subr.bf16.mxu0 %v8720_v6  ;;  %v9096_v14 = vld [vmem:[%s9078_s8 + $0x10] sm:$0xff]   ;;  %v8732_v19 = vld [vmem:[#allocation6 + $0x64] ss:$24 sps:$4 sm:$0xff]   ;;  %v8734_v20 = vld [vmem:[#allocation6 + $0x60] ss:$24 sps:$4 sm:$0xff]   ;;  %vm4808_vm0 = vcmask 1043456  }
  0x4e   : > { %5384 = vxpose.xlu0.b32.start.end [1/1] (short) %v5383_v7, 128  ;;  %v246_v15 = vunpack.c.l.bf16 %v9096_v14  ;;  %v247_v16 = vunpack.c.h.bf16 %v9096_v14  ;;  %v8735_v21 = vld [vmem:[#allocation6 + $0x34] ss:$24 sps:$4 sm:$0xff]   ;;  %v8737_v22 = vld [vmem:[#allocation6 + $0x30] ss:$24 sps:$4 sm:$0xff]   ;;  %v8738_v23 = vld [vmem:[#allocation6 + $0x4] ss:$24 sps:$4 sm:$0xff]  }
  0x4f   : > { %v8740_v24 = vld [vmem:[#allocation6] ss:$24 sps:$4 sm:$0xff]   ;;  %v9103_v25 = vld [vmem:[%s9078_s8 + $0x8] sm:$0xff]   ;;  %vm4804_vm1 = vcmask 457728   ;;  %s5128_s12 = sshll.u32 %s9074_s5, 7  ;;  %s5284_s13 = sshll.u32 %s8979_s19, 10 }
  0x50   : > { %1113 = vmatpush1.bf16.msra.mxu0 %v8722_v8  ;;  %v5547_v18 = vpack.i.bf16 %v247_v16, %v246_v15  ;;  %v9110_v26 = vld [vmem:[%s9078_s8 + $0x18] sm:$0xff]   ;;  %v244_v27 = vunpack.c.l.bf16 %v9103_v25  ;;  %v245_v28 = vunpack.c.h.bf16 %v9103_v25  ;;  %s9439_s11 = scalar_lea.vmem [#allocation8], %s5128_s12  ;;  %s9460_s30 = scalar_lea.hbm %s9511_s4, %s5284_s13 }
  0x51   : > { %1114 = vmatprep.subr.bf16.mxu0 %v8723_v9  ;;  %v248_v30 = vunpack.c.l.bf16 %v9110_v26  ;;  %v249_v31 = vunpack.c.h.bf16 %v9110_v26  ;;  %s5035_s14 = sshll.u32 %s9439_s11, 4  ;;  %s5022_s19 = scalar_lea.sflag [#allocation5], %s9074_s5  ;;  %s9462_s14 = int_to_ptr.vmem [resolvable:$true] %s5035_s14 }
  0x52   : > { %5548 = vxpose.xlu1.b32.start.end [1/1] (short) %v5547_v18, 128  ;;  %v5465_v29 = vpack.i.bf16 %v245_v28, %v244_v27  ;;  %s8852_s6 = scalar_lea.vmem %s9462_s14, 2048  ;;  %p9527_p11 = scmp.ne.s32.totalorder %s9521_s10, 0 }
  0x53   : > { %v5629_v32 = vpack.i.bf16 %v249_v31, %v248_v30  ;;  %p8853_p3 = scmp.ne.s32.totalorder %s9462_s14, %s8852_s6  ;;  %s8929_s7 = smov [#allocation8]  }
  0x54   : > { %1115 = vmatpush1.bf16.msra.mxu0 %v8725_v10  ;;  %s8856_s8 = sshll.u32 %s8929_s7, 4  ;;  %s8857_s8 = int_to_ptr.vmem [resolvable:$false] %s8856_s8 }
  0x55   : > { %1116 = vmatprep.subr.bf16.mxu0 %v8726_v11  ;;  %p8854_p7 = pnand %p8853_p3, %p9527_p11  ;;  %s8858_s21 = scalar_lea.vmem %s8857_s8, 4096 }
  0x56   : > { %p8859_p10 = scmp.lt.s32.totalorder %s9462_s14, %s8857_s8  ;;  %p8860_p2 = scmp.lt.s32.totalorder %s8858_s21, %s8852_s6 }
  0x57   : > { %p8855_p12 = pneg %p8854_p7 }
  0x58   : > { %1117 = vmatpush1.bf16.msra.mxu0 %v8728_v12  ;;  %p8861_p13 = por %p8860_p2, %p8859_p10 }
  0x59   : > { %1118 = vmatprep.subr.bf16.mxu0 %v8729_v13 }
  0x5a   : > { %p8862_p0 = pnand %p8861_p13, %p8855_p12 }
  0x5c   : > { %1119 = vmatpush1.bf16.msra.mxu0 %v8731_v17 }
  0x5d   : > { %1120 = vmatprep.subr.bf16.mxu0 %v8732_v19 }
  0x60   : > { %1121 = vmatpush1.bf16.msra.mxu0 %v8734_v20 }
  0x61   : > { %1122 = vmatprep.subr.bf16.mxu0 %v8735_v21 }
  0x64   : > { %1123 = vmatpush1.bf16.msra.mxu0 %v8737_v22 }
  0x65   : > { %1124 = vmatprep.subr.bf16.mxu0 %v8738_v23 }
  0x68   : > { %1125 = vmatpush1.bf16.msra.mxu0 %v8740_v24 }
  0x6b   : > { %1143 = vmatmul.mubr.bf16.vlgmr.msra.gmra.mxu0 %v9091_v1 }
  0x6c   : > { %1152 = vmatprep.mubr.bf16.mxu0 %v8928_v0 }
  0x73   : > { %1153 = vmatmul.mubr.bf16.gmra.mxu0 %v9103_v25 }
  0x74   : > { %1162 = vmatprep.mubr.bf16.mxu0 %v8928_v0 }
  0x7b   : > { %1163 = vmatmul.mubr.bf16.gmra.mxu0 %v9096_v14 }
  0x7c   : > { %1172 = vmatprep.mubr.bf16.mxu0 %v8928_v0 }
  0x83   : > { %1173 = vmatmul.mubr.bf16.gmra.mxu0 %v9110_v26 }
  0x84   : > { %1288 = vmatprep.mubr.bf16.mxu0 %v8928_v0 }
  0x8b   : > { %5466 = vxpose.xlu0.b32.start.end [1/1] (short) %v5465_v29, 128 }
  0x8f   : > { %5630 = vxpose.xlu1.b32.start.end [1/1] (short) %v5629_v32, 128 }
  0xca   : > { %v5385_v33 = vpop.trf.xlu0 }
  0xcb   : > { %5712 = vxpose.xlu0.b32.start [1/16] (narrow) %v5385_v33, 8 }
  0xce   : > { %v5390_v34 = vpop.trf.xlu0  ;;  %v5549_v36 = vpop.trf.xlu1 }
  0xcf   : > { %5714 = vxpose.xlu0.b32.cont [2/16] (narrow) %v5390_v34, 8 }
  0xd2   : > { %v5395_v35 = vpop.trf.xlu0  ;;  %v5554_v38 = vpop.trf.xlu1 }
  0xd3   : > { %5716 = vxpose.xlu0.b32.cont [3/16] (narrow) %v5395_v35, 8 }
  0xd6   : > { %v5400_v37 = vpop.trf.xlu0  ;;  %v5559_v40 = vpop.trf.xlu1 }
  0xd7   : > { %5718 = vxpose.xlu0.b32.cont [4/16] (narrow) %v5400_v37, 8 }
  0xda   : > { %v5405_v39 = vpop.trf.xlu0  ;;  %v5564_v42 = vpop.trf.xlu1 }
  0xdb   : > { %5720 = vxpose.xlu0.b32.cont [5/16] (narrow) %v5405_v39, 8 }
  0xde   : > { %v5410_v41 = vpop.trf.xlu0  ;;  %v5569_v44 = vpop.trf.xlu1 }
  0xdf   : > { %5722 = vxpose.xlu0.b32.cont [6/16] (narrow) %v5410_v41, 8 }
  0xe2   : > { %v5415_v43 = vpop.trf.xlu0  ;;  %v5574_v46 = vpop.trf.xlu1 }
  0xe3   : > { %5724 = vxpose.xlu0.b32.cont [7/16] (narrow) %v5415_v43, 8 }
  0xe6   : > { %v5420_v45 = vpop.trf.xlu0  ;;  %v5579_v48 = vpop.trf.xlu1 }
  0xe7   : > { %5726 = vxpose.xlu0.b32.cont [8/16] (narrow) %v5420_v45, 8 }
  0xea   : > { %v5425_v47 = vpop.trf.xlu0  ;;  %v5584_v50 = vpop.trf.xlu1 }
  0xeb   : > { %5728 = vxpose.xlu0.b32.cont [9/16] (narrow) %v5425_v47, 8 }
  0xee   : > { %v5430_v49 = vpop.trf.xlu0  ;;  %v5589_v52 = vpop.trf.xlu1 }
  0xef   : > { %5730 = vxpose.xlu0.b32.cont [10/16] (narrow) %v5430_v49, 8 }
  0xf2   : > { %v5435_v51 = vpop.trf.xlu0  ;;  %v5594_v54 = vpop.trf.xlu1 }
  0xf3   : > { %5732 = vxpose.xlu0.b32.cont [11/16] (narrow) %v5435_v51, 8 }
  0xf6   : > { %v5440_v53 = vpop.trf.xlu0  ;;  %v5599_v56 = vpop.trf.xlu1 }
  0xf7   : > { %5734 = vxpose.xlu0.b32.cont [12/16] (narrow) %v5440_v53, 8 }
  0xfa   : > { %v5445_v55 = vpop.trf.xlu0  ;;  %v9118_v58 = vpop.trf.xlu1 }
  0xfb   : > { %5736 = vxpose.xlu0.b32.cont [13/16] (narrow) %v5445_v55, 8 }
  0xfe   : > { %v5450_v57 = vpop.trf.xlu0  ;;  %v9120_v60 = vpop.trf.xlu1 }
  0xff   : > { %5738 = vxpose.xlu0.b32.cont [14/16] (narrow) %v5450_v57, 8 }
 0x102   : > { %v5455_v59 = vpop.trf.xlu0  ;;  %v9122_v62 = vpop.trf.xlu1 }
 0x103   : > { %5740 = vxpose.xlu0.b32.cont [15/16] (narrow) %v5455_v59, 8 }
 0x106   : > { %v5460_v61 = vpop.trf.xlu0  ;;  %v9124_v2 = vpop.trf.xlu1 }
 0x107   : > { %5742 = vxpose.xlu0.b32.end [16/16] (narrow) %v5460_v61, 8 }
 0x10a   : > { %v5467_v63 = vpop.trf.xlu0  ;;  %v9126_v4 = vpop.trf.xlu1 }
 0x10b   : > { %5749 = vxpose.xlu1.b32.start [1/16] (narrow) %v5467_v63, 8  ;;  %5786 = vxpose.xlu0.b32.start [1/16] (narrow) %v5549_v36, 8 }
 0x10e   : > { %v5472_v3 = vpop.trf.xlu0  ;;  %v9128_v6 = vpop.trf.xlu1 }
 0x10f   : > { %5751 = vxpose.xlu1.b32.cont [2/16] (narrow) %v5472_v3, 8  ;;  %5788 = vxpose.xlu0.b32.cont [2/16] (narrow) %v5554_v38, 8 }
 0x112   : > { %v5477_v5 = vpop.trf.xlu0  ;;  %v9130_v8 = vpop.trf.xlu1 }
 0x113   : > { %5753 = vxpose.xlu1.b32.cont [3/16] (narrow) %v5477_v5, 8  ;;  %5790 = vxpose.xlu0.b32.cont [3/16] (narrow) %v5559_v40, 8 }
 0x116   : > { %v5482_v7 = vpop.trf.xlu0  ;;  %v9132_v10 = vpop.trf.xlu1 }
 0x117   : > { %5755 = vxpose.xlu1.b32.cont [4/16] (narrow) %v5482_v7, 8  ;;  %5792 = vxpose.xlu0.b32.cont [4/16] (narrow) %v5564_v42, 8 }
 0x11a   : > { %v5487_v9 = vpop.trf.xlu0  ;;  %v9134_v12 = vpop.trf.xlu1 }
 0x11b   : > { %5757 = vxpose.xlu1.b32.cont [5/16] (narrow) %v5487_v9, 8  ;;  %5794 = vxpose.xlu0.b32.cont [5/16] (narrow) %v5569_v44, 8 }
 0x11e   : > { %v5492_v11 = vpop.trf.xlu0  ;;  %v5651_v15 = vpop.trf.xlu1 }
 0x11f   : > { %5759 = vxpose.xlu1.b32.cont [6/16] (narrow) %v5492_v11, 8  ;;  %5796 = vxpose.xlu0.b32.cont [6/16] (narrow) %v5574_v46, 8  ;;  %v8747_v11 = vld [vmem:[#allocation6 + $0x158] ss:$24 sps:$4 sm:$0xff]  }
 0x122   : > { %v5497_v13 = vpop.trf.xlu0  ;;  %v5656_v17 = vpop.trf.xlu1 }
 0x123   : > { %5761 = vxpose.xlu1.b32.cont [7/16] (narrow) %v5497_v13, 8  ;;  %5798 = vxpose.xlu0.b32.cont [7/16] (narrow) %v5579_v48, 8  ;;  %v8748_v13 = vld [vmem:[#allocation6 + $0x12c] ss:$24 sps:$4 sm:$0xff]  }
 0x126   : > { %v5502_v16 = vpop.trf.xlu0  ;;  %v5661_v20 = vpop.trf.xlu1 }
 0x127   : > { %5763 = vxpose.xlu1.b32.cont [8/16] (narrow) %v5502_v16, 8  ;;  %5800 = vxpose.xlu0.b32.cont [8/16] (narrow) %v5584_v50, 8 }
 0x12a   : > { %v5507_v18 = vpop.trf.xlu0  ;;  %v5666_v24 = vpop.trf.xlu1 }
 0x12b   : > { %v1144_v19 = vpop.f32.mrf.mxu0  ;;  %5765 = vxpose.xlu1.b32.cont [9/16] (narrow) %v5507_v18, 8  ;;  %5802 = vxpose.xlu0.b32.cont [9/16] (narrow) %v5589_v52, 8  ;;  %v8753_v18 = vld [vmem:[#allocation6 + $0xf8] ss:$24 sps:$4 sm:$0xff]  }
 0x12d   : > { %v9136_v22 = vpop.f32.mrf.mxu0 }
 0x12e   : > { %v5512_v21 = vpop.trf.xlu0  ;;  %v5671_v31 = vpop.trf.xlu1 }
 0x12f   : > { %v1148_v23 = vpop.f32.mrf.mxu0  ;;  %5767 = vxpose.xlu1.b32.cont [10/16] (narrow) %v5512_v21, 8  ;;  %5804 = vxpose.xlu0.b32.cont [10/16] (narrow) %v5594_v54, 8  ;;  %v8756_v21 = vld [vmem:[#allocation6 + $0xc8] ss:$24 sps:$4 sm:$0xff]  }
 0x130   : > { %v5859_v51 = vpack.i.bf16 %v1148_v23, %v1144_v19 }
 0x131   : > { %v9138_v28 = vpop.f32.mrf.mxu0 }
 0x132   : > { %v5517_v27 = vpop.trf.xlu0  ;;  %v6335_v29 = vpack.i.bf16 %v9138_v28, %v9136_v22  ;;  %v5676_v35 = vpop.trf.xlu1 }
 0x133   : > { %v1154_v30 = vpop.f32.mrf.mxu0  ;;  %5769 = vxpose.xlu1.b32.cont [11/16] (narrow) %v5517_v27, 8  ;;  %5806 = vxpose.xlu0.b32.cont [11/16] (narrow) %v5599_v56, 8  ;;  %v8759_v27 = vld [vmem:[#allocation6 + $0x98] ss:$24 sps:$4 sm:$0xff]  }
 0x135   : > { %v9142_v33 = vpop.f32.mrf.mxu0 }
 0x136   : > { %v5522_v32 = vpop.trf.xlu0  ;;  %v5681_v40 = vpop.trf.xlu1 }
 0x137   : > { %v1158_v34 = vpop.f32.mrf.mxu0  ;;  %5771 = vxpose.xlu1.b32.cont [12/16] (narrow) %v5522_v32, 8  ;;  %5808 = vxpose.xlu0.b32.cont [12/16] (narrow) %v9118_v58, 8  ;;  %v8762_v32 = vld [vmem:[#allocation6 + $0x68] ss:$24 sps:$4 sm:$0xff]  }
 0x138   : > { %v5941_v58 = vpack.i.bf16 %v1158_v34, %v1154_v30 }
 0x139   : > { %v9144_v37 = vpop.f32.mrf.mxu0 }
 0x13a   : > { %v5527_v36 = vpop.trf.xlu0  ;;  %v6417_v38 = vpack.i.bf16 %v9144_v37, %v9142_v33  ;;  %v5686_v44 = vpop.trf.xlu1 }
 0x13b   : > { %v1164_v39 = vpop.f32.mrf.mxu0  ;;  %5773 = vxpose.xlu1.b32.cont [13/16] (narrow) %v5527_v36, 8  ;;  %5810 = vxpose.xlu0.b32.cont [13/16] (narrow) %v9120_v60, 8  ;;  %v8765_v36 = vld [vmem:[#allocation6 + $0x38] ss:$24 sps:$4 sm:$0xff]  }
 0x13d   : > { %v9149_v42 = vpop.f32.mrf.mxu0 }
 0x13e   : > { %v5532_v41 = vpop.trf.xlu0  ;;  %v5691_v48 = vpop.trf.xlu1 }
 0x13f   : > { %v1168_v43 = vpop.f32.mrf.mxu0  ;;  %5775 = vxpose.xlu1.b32.cont [14/16] (narrow) %v5532_v41, 8  ;;  %5812 = vxpose.xlu0.b32.cont [14/16] (narrow) %v9122_v62, 8  ;;  %v8768_v41 = vld [vmem:[#allocation6 + $0x8] ss:$24 sps:$4 sm:$0xff]  }
 0x140   : > { %v6023_v55 = vpack.i.bf16 %v1168_v43, %v1164_v39 }
 0x141   : > { %v9152_v46 = vpop.f32.mrf.mxu0 }
 0x142   : > { %v5537_v45 = vpop.trf.xlu0  ;;  %v6499_v47 = vpack.i.bf16 %v9152_v46, %v9149_v42  ;;  %v5696_v50 = vpop.trf.xlu1 }
 0x143   : > { %5777 = vxpose.xlu1.b32.cont [15/16] (narrow) %v5537_v45, 8  ;;  %5814 = vxpose.xlu0.b32.cont [15/16] (narrow) %v9124_v2, 8  ;;  %v1174_v59 = vpop.f32.mrf.mxu0 }
 0x145   : > { %v9169_v60 = vpop.f32.mrf.mxu0 }
 0x146   : > { %v5542_v49 = vpop.trf.xlu0  ;;  %v5701_v53 = vpop.trf.xlu1 }
 0x147   : > { %5779 = vxpose.xlu1.b32.end [16/16] (narrow) %v5542_v49, 8  ;;  %5816 = vxpose.xlu0.b32.end [16/16] (narrow) %v9126_v4, 8  ;;  %v1178_v61 = vpop.f32.mrf.mxu0 }
 0x148   : > { %v6105_v62 = vpack.i.bf16 %v1178_v61, %v1174_v59 }
 0x14a   : > { %v9159_v52 = vpop.trf.xlu0  ;;  %v5706_v54 = vpop.trf.xlu1 }
 0x14b   : > { %5823 = vxpose.xlu1.b32.start [1/16] (narrow) %v9128_v6, 8  ;;  %5860 = vxpose.xlu0.b32.start.end [1/1] (short) %v5859_v51, 128 }
 0x14f   : > { %5825 = vxpose.xlu1.b32.cont [2/16] (narrow) %v9130_v8, 8 }
 0x153   : > { %5827 = vxpose.xlu1.b32.cont [3/16] (narrow) %v9132_v10, 8  ;;  %v8745_v10 = vld [vmem:[#allocation6 + $0x15c] ss:$24 sps:$4 sm:$0xff]  }
 0x154   : > { %1183 = vmatprep.subr.bf16.mxu1 %v8745_v10 }
 0x155   : > { %1184 = vmatpush1.bf16.msra.mxu1 %v8747_v11 }
 0x156   : > { %1185 = vmatprep.subr.bf16.mxu1 %v8748_v13 }
 0x157   : > { %5829 = vxpose.xlu1.b32.cont [4/16] (narrow) %v9134_v12, 8 }
 0x15b   : > { %5831 = vxpose.xlu1.b32.cont [5/16] (narrow) %v5651_v15, 8  ;;  %v8750_v15 = vld [vmem:[#allocation6 + $0x128] ss:$24 sps:$4 sm:$0xff]  }
 0x15c   : > { %1186 = vmatpush1.bf16.msra.mxu1 %v8750_v15 }
 0x15f   : > { %5833 = vxpose.xlu1.b32.cont [6/16] (narrow) %v5656_v17, 8  ;;  %v8751_v17 = vld [vmem:[#allocation6 + $0xfc] ss:$24 sps:$4 sm:$0xff]  }
 0x160   : > { %1187 = vmatprep.subr.bf16.mxu1 %v8751_v17 }
 0x161   : > { %1188 = vmatpush1.bf16.msra.mxu1 %v8753_v18 }
 0x163   : > { %5835 = vxpose.xlu1.b32.cont [7/16] (narrow) %v5661_v20, 8  ;;  %v8754_v20 = vld [vmem:[#allocation6 + $0xcc] ss:$24 sps:$4 sm:$0xff]  }
 0x164   : > { %1189 = vmatprep.subr.bf16.mxu1 %v8754_v20 }
 0x165   : > { %1190 = vmatpush1.bf16.msra.mxu1 %v8756_v21 }
 0x167   : > { %5837 = vxpose.xlu1.b32.cont [8/16] (narrow) %v5666_v24, 8  ;;  %v8757_v24 = vld [vmem:[#allocation6 + $0x9c] ss:$24 sps:$4 sm:$0xff]  }
 0x168   : > { %1191 = vmatprep.subr.bf16.mxu1 %v8757_v24  ;;  %v5744_v24 = vunpack.i.l.bf16 %v9159_v52 }
 0x169   : > { %1192 = vmatpush1.bf16.msra.mxu1 %v8759_v27 }
 0x16b   : > { %5839 = vxpose.xlu1.b32.cont [9/16] (narrow) %v5671_v31, 8  ;;  %v8760_v31 = vld [vmem:[#allocation6 + $0x6c] ss:$24 sps:$4 sm:$0xff]  }
 0x16c   : > { %1193 = vmatprep.subr.bf16.mxu1 %v8760_v31 }
 0x16d   : > { %1194 = vmatpush1.bf16.msra.mxu1 %v8762_v32 }
 0x16f   : > { %5841 = vxpose.xlu1.b32.cont [10/16] (narrow) %v5676_v35, 8  ;;  %v8763_v35 = vld [vmem:[#allocation6 + $0x3c] ss:$24 sps:$4 sm:$0xff]  }
 0x170   : > { %1195 = vmatprep.subr.bf16.mxu1 %v8763_v35 }
 0x171   : > { %1196 = vmatpush1.bf16.msra.mxu1 %v8765_v36 }
 0x173   : > { %5843 = vxpose.xlu1.b32.cont [11/16] (narrow) %v5681_v40, 8  ;;  %v8766_v40 = vld [vmem:[#allocation6 + $0xc] ss:$24 sps:$4 sm:$0xff]  }
 0x174   : > { %1197 = vmatprep.subr.bf16.mxu1 %v8766_v40 }
 0x175   : > { %1198 = vmatpush1.bf16.msra.mxu1 %v8768_v41 }
 0x177   : > { %5845 = vxpose.xlu1.b32.cont [12/16] (narrow) %v5686_v44, 8 }
 0x178   : > { %1216 = vmatmul.mubr.bf16.vlgmr.msra.gmra.mxu1 %v9091_v1 }
 0x179   : > { %1225 = vmatprep.mubr.bf16.mxu1 %v8928_v0 }
 0x17b   : > { %5847 = vxpose.xlu1.b32.cont [13/16] (narrow) %v5691_v48, 8 }
 0x17f   : > { %5849 = vxpose.xlu1.b32.cont [14/16] (narrow) %v5696_v50, 8 }
 0x180   : > { %1226 = vmatmul.mubr.bf16.gmra.mxu1 %v9103_v25 }
 0x181   : > { %1235 = vmatprep.mubr.bf16.mxu1 %v8928_v0 }
 0x183   : > { %5851 = vxpose.xlu1.b32.cont [15/16] (narrow) %v5701_v53, 8 }
 0x187   : > { %5853 = vxpose.xlu1.b32.end [16/16] (narrow) %v5706_v54, 8  ;;  %v9165_v56 = vpop.trf.xlu0  ;;  %v9167_v57 = vpop.trf.xlu1 }
 0x188   : > { %6024 = vxpose.xlu0.b32.start.end [1/1] (short) %v6023_v55, 128  ;;  %1236 = vmatmul.mubr.bf16.gmra.mxu1 %v9096_v14 }
 0x189   : > { %1245 = vmatprep.mubr.bf16.mxu1 %v8928_v0 }
 0x18b   : > { %5942 = vxpose.xlu1.b32.start.end [1/1] (short) %v5941_v58, 128 }
 0x190   : > { %1246 = vmatmul.mubr.bf16.gmra.mxu1 %v9110_v26 }
 0x191   : > { %4865 = vmatprep.mubr.bf16.mxu1 %v8928_v0 }
 0x1c7   : > { %v5861_v63 = vpop.trf.xlu0  ;;  %v9171_v2 = vpop.trf.xlu1 }
 0x1c8   : > { %6106 = vxpose.xlu1.b32.start.end [1/1] (short) %v6105_v62, 128  ;;  %6188 = vxpose.xlu0.b32.start [1/16] (narrow) %v5861_v63, 8  ;;  %v5858_v42 = vunpack.i.h.bf16 %v9171_v2  ;;  %v5855_v46 = vunpack.i.l.bf16 %v9171_v2 }
 0x1cb   : > { %v5866_v3 = vpop.trf.xlu0 }
 0x1cc   : > { %6190 = vxpose.xlu0.b32.cont [2/16] (narrow) %v5866_v3, 8 }
 0x1cf   : > { %v5871_v4 = vpop.trf.xlu0 }
 0x1d0   : > { %6192 = vxpose.xlu0.b32.cont [3/16] (narrow) %v5871_v4, 8 }
 0x1d3   : > { %v5876_v5 = vpop.trf.xlu0 }
 0x1d4   : > { %6194 = vxpose.xlu0.b32.cont [4/16] (narrow) %v5876_v5, 8 }
 0x1d7   : > { %v5881_v6 = vpop.trf.xlu0 }
 0x1d8   : > { %6196 = vxpose.xlu0.b32.cont [5/16] (narrow) %v5881_v6, 8 }
 0x1db   : > { %v5886_v7 = vpop.trf.xlu0 }
 0x1dc   : > { %6198 = vxpose.xlu0.b32.cont [6/16] (narrow) %v5886_v7, 8 }
 0x1df   : > { %v5891_v8 = vpop.trf.xlu0 }
 0x1e0   : > { %6200 = vxpose.xlu0.b32.cont [7/16] (narrow) %v5891_v8, 8 }
 0x1e3   : > { %v5896_v9 = vpop.trf.xlu0 }
 0x1e4   : > { %6202 = vxpose.xlu0.b32.cont [8/16] (narrow) %v5896_v9, 8 }
 0x1e7   : > { %v5901_v12 = vpop.trf.xlu0 }
 0x1e8   : > { %6204 = vxpose.xlu0.b32.cont [9/16] (narrow) %v5901_v12, 8 }
 0x1eb   : > { %v5906_v16 = vpop.trf.xlu0 }
 0x1ec   : > { %6206 = vxpose.xlu0.b32.cont [10/16] (narrow) %v5906_v16, 8 }
 0x1ef   : > { %v5911_v19 = vpop.trf.xlu0 }
 0x1f0   : > { %6208 = vxpose.xlu0.b32.cont [11/16] (narrow) %v5911_v19, 8 }
 0x1f3   : > { %v5916_v23 = vpop.trf.xlu0 }
 0x1f4   : > { %6210 = vxpose.xlu0.b32.cont [12/16] (narrow) %v5916_v23, 8  ;;  %v5747_v23 = vunpack.i.h.bf16 %v9159_v52 }
 0x1f7   : > { %v5921_v30 = vpop.trf.xlu0 }
 0x1f8   : > { %6212 = vxpose.xlu0.b32.cont [13/16] (narrow) %v5921_v30, 8 }
 0x1fb   : > { %v5926_v34 = vpop.trf.xlu0 }
 0x1fc   : > { %6214 = vxpose.xlu0.b32.cont [14/16] (narrow) %v5926_v34, 8 }
 0x1ff   : > { %v5931_v39 = vpop.trf.xlu0 }
 0x200   : > { %6216 = vxpose.xlu0.b32.cont [15/16] (narrow) %v5931_v39, 8 }
 0x203   : > { %v5936_v43 = vpop.trf.xlu0 }
 0x204   : > { %6218 = vxpose.xlu0.b32.end [16/16] (narrow) %v5936_v43, 8 }
 0x207   : > { %v5943_v44 = vpop.trf.xlu1  ;;  %v6025_v45 = vpop.trf.xlu0 }
 0x208   : > { %6225 = vxpose.xlu1.b32.start [1/16] (narrow) %v5943_v44, 8  ;;  %6262 = vxpose.xlu0.b32.start [1/16] (narrow) %v6025_v45, 8 }
 0x20b   : > { %v5948_v48 = vpop.trf.xlu1  ;;  %v6030_v49 = vpop.trf.xlu0 }
 0x20c   : > { %6227 = vxpose.xlu1.b32.cont [2/16] (narrow) %v5948_v48, 8  ;;  %6264 = vxpose.xlu0.b32.cont [2/16] (narrow) %v6030_v49, 8 }
 0x20f   : > { %v5953_v50 = vpop.trf.xlu1  ;;  %v6035_v51 = vpop.trf.xlu0 }
 0x210   : > { %6229 = vxpose.xlu1.b32.cont [3/16] (narrow) %v5953_v50, 8  ;;  %6266 = vxpose.xlu0.b32.cont [3/16] (narrow) %v6035_v51, 8 }
 0x213   : > { %v5958_v53 = vpop.trf.xlu1  ;;  %v6040_v54 = vpop.trf.xlu0 }
 0x214   : > { %6231 = vxpose.xlu1.b32.cont [4/16] (narrow) %v5958_v53, 8  ;;  %6268 = vxpose.xlu0.b32.cont [4/16] (narrow) %v6040_v54, 8  ;;  %v5821_v53 = vunpack.i.h.bf16 %v9165_v56  ;;  %v5818_v54 = vunpack.i.l.bf16 %v9165_v56 }
 0x217   : > { %v5963_v55 = vpop.trf.xlu1  ;;  %v6045_v58 = vpop.trf.xlu0 }
 0x218   : > { %6233 = vxpose.xlu1.b32.cont [5/16] (narrow) %v5963_v55, 8  ;;  %6270 = vxpose.xlu0.b32.cont [5/16] (narrow) %v6045_v58, 8  ;;  %v5784_v55 = vunpack.i.h.bf16 %v9167_v57  ;;  %v5781_v58 = vunpack.i.l.bf16 %v9167_v57 }
 0x21b   : > { %v5968_v59 = vpop.trf.xlu1  ;;  %v6050_v61 = vpop.trf.xlu0 }
 0x21c   : > { %6235 = vxpose.xlu1.b32.cont [6/16] (narrow) %v5968_v59, 8  ;;  %6272 = vxpose.xlu0.b32.cont [6/16] (narrow) %v6050_v61, 8 }
 0x21f   : > { %v5973_v62 = vpop.trf.xlu1  ;;  %v6055_v63 = vpop.trf.xlu0 }
 0x220   : > { %6237 = vxpose.xlu1.b32.cont [7/16] (narrow) %v5973_v62, 8  ;;  %6274 = vxpose.xlu0.b32.cont [7/16] (narrow) %v6055_v63, 8 }
 0x223   : > { %v5978_v3 = vpop.trf.xlu1  ;;  %v6060_v4 = vpop.trf.xlu0 }
 0x224   : > { %6239 = vxpose.xlu1.b32.cont [8/16] (narrow) %v5978_v3, 8  ;;  %6276 = vxpose.xlu0.b32.cont [8/16] (narrow) %v6060_v4, 8 }
 0x227   : > { %v5983_v5 = vpop.trf.xlu1  ;;  %v6065_v6 = vpop.trf.xlu0 }
 0x228   : > { %6241 = vxpose.xlu1.b32.cont [9/16] (narrow) %v5983_v5, 8  ;;  %6278 = vxpose.xlu0.b32.cont [9/16] (narrow) %v6065_v6, 8 }
 0x22b   : > { %v5988_v7 = vpop.trf.xlu1  ;;  %v6070_v8 = vpop.trf.xlu0 }
 0x22c   : > { %6243 = vxpose.xlu1.b32.cont [10/16] (narrow) %v5988_v7, 8  ;;  %6280 = vxpose.xlu0.b32.cont [10/16] (narrow) %v6070_v8, 8  ;;  %v1180_v7 = vpop.f32.mrf.mxu0 }
 0x22d   : > { %v6581_v8 = vpack.i.bf16 %v1180_v7, %v9169_v60 }
 0x22f   : > { %v5993_v9 = vpop.trf.xlu1  ;;  %v6075_v10 = vpop.trf.xlu0 }
 0x230   : > { %6245 = vxpose.xlu1.b32.cont [11/16] (narrow) %v5993_v9, 8  ;;  %6282 = vxpose.xlu0.b32.cont [11/16] (narrow) %v6075_v10, 8 }
 0x233   : > { %v5998_v11 = vpop.trf.xlu1  ;;  %v6080_v12 = vpop.trf.xlu0 }
 0x234   : > { %6247 = vxpose.xlu1.b32.cont [12/16] (narrow) %v5998_v11, 8  ;;  %6284 = vxpose.xlu0.b32.cont [12/16] (narrow) %v6080_v12, 8 }
 0x237   : > { %v6003_v13 = vpop.trf.xlu1  ;;  %v6085_v15 = vpop.trf.xlu0 }
 0x238   : > { %6249 = vxpose.xlu1.b32.cont [13/16] (narrow) %v6003_v13, 8  ;;  %6286 = vxpose.xlu0.b32.cont [13/16] (narrow) %v6085_v15, 8 }
 0x23b   : > { %v6008_v16 = vpop.trf.xlu1  ;;  %v6090_v17 = vpop.trf.xlu0 }
 0x23c   : > { %6251 = vxpose.xlu1.b32.cont [14/16] (narrow) %v6008_v16, 8  ;;  %6288 = vxpose.xlu0.b32.cont [14/16] (narrow) %v6090_v17, 8 }
 0x23f   : > { %v6013_v18 = vpop.trf.xlu1  ;;  %v6095_v19 = vpop.trf.xlu0 }
 0x240   : > { %6253 = vxpose.xlu1.b32.cont [15/16] (narrow) %v6013_v18, 8  ;;  %6290 = vxpose.xlu0.b32.cont [15/16] (narrow) %v6095_v19, 8  ;;  %v9215_v18 = vpop.f32.mrf.mxu1 }
 0x243   : > { %v6018_v20 = vpop.trf.xlu1  ;;  %v6100_v21 = vpop.trf.xlu0 }
 0x244   : > { %6255 = vxpose.xlu1.b32.end [16/16] (narrow) %v6018_v20, 8  ;;  %6292 = vxpose.xlu0.b32.end [16/16] (narrow) %v6100_v21, 8  ;;  %v9217_v20 = vpop.f32.mrf.mxu1 }
 0x247   : > { %v6107_v27 = vpop.trf.xlu1  ;;  %v6219_v30 = vpop.trf.xlu0 }
 0x248   : > { %v6223_v31 = vunpack.i.h.bf16 %v6219_v30  ;;  %v6220_v32 = vunpack.i.l.bf16 %v6219_v30  ;;  %6299 = vxpose.xlu1.b32.start [1/16] (narrow) %v6107_v27, 8  ;;  %6336 = vxpose.xlu0.b32.start.end [1/1] (short) %v6335_v29, 128 }
 0x24a   : > { %v9183_v35 = vpack.c.bf16 %v6223_v31, %v5747_v23  ;;  %v9185_v36 = vpack.c.bf16 %v6220_v32, %v5744_v24  ;;  %v9219_v23 = vpop.f32.mrf.mxu1 }
 0x24b   : > { %v6112_v34 = vpop.trf.xlu1 }
 0x24c   : > { %6301 = vxpose.xlu1.b32.cont [2/16] (narrow) %v6112_v34, 8  ;;  %v9221_v27 = vpop.f32.mrf.mxu1 }
 0x24d   : > { %v7287_v30 = vpack.i.bf16 %v9221_v27, %v9217_v20 }
 0x24e   : > { %v9225_v34 = vpop.f32.mrf.mxu1 }
 0x24f   : > { %v6117_v39 = vpop.trf.xlu1 }
 0x250   : > { %6303 = vxpose.xlu1.b32.cont [3/16] (narrow) %v6117_v39, 8 }
 0x253   : > { %v6122_v40 = vpop.trf.xlu1 }
 0x254   : > { %6305 = vxpose.xlu1.b32.cont [4/16] (narrow) %v6122_v40, 8  ;;  %v9227_v40 = vpop.f32.mrf.mxu1 }
 0x257   : > { %v6127_v52 = vpop.trf.xlu1 }
 0x258   : > { %6307 = vxpose.xlu1.b32.cont [5/16] (narrow) %v6127_v52, 8  ;;  %v9229_v52 = vpop.f32.mrf.mxu1 }
 0x25b   : > { %v6132_v41 = vpop.trf.xlu1 }
 0x25c   : > { %6309 = vxpose.xlu1.b32.cont [6/16] (narrow) %v6132_v41, 8 }
 0x25f   : > { %v6137_v43 = vpop.trf.xlu1 }
 0x260   : > { %6311 = vxpose.xlu1.b32.cont [7/16] (narrow) %v6137_v43, 8  ;;  %v9231_v43 = vpop.f32.mrf.mxu1 }
 0x263   : > { %v6142_v44 = vpop.trf.xlu1 }
 0x264   : > { %6313 = vxpose.xlu1.b32.cont [8/16] (narrow) %v6142_v44, 8  ;;  %v7369_v44 = vpack.i.bf16 %v9231_v43, %v9227_v40 }
 0x267   : > { %v6147_v45 = vpop.trf.xlu1 }
 0x268   : > { %6315 = vxpose.xlu1.b32.cont [9/16] (narrow) %v6147_v45, 8  ;;  %v9235_v45 = vpop.f32.mrf.mxu1 }
 0x26b   : > { %v6152_v48 = vpop.trf.xlu1 }
 0x26c   : > { %6317 = vxpose.xlu1.b32.cont [10/16] (narrow) %v6152_v48, 8 }
 0x26f   : > { %v6157_v49 = vpop.trf.xlu1 }
 0x270   : > { %6319 = vxpose.xlu1.b32.cont [11/16] (narrow) %v6157_v49, 8 }
 0x273   : > { %v6162_v22 = vpop.trf.xlu1 }
 0x274   : > { %6321 = vxpose.xlu1.b32.cont [12/16] (narrow) %v6162_v22, 8  ;;  %v9237_v22 = vpop.f32.mrf.mxu1 }
 0x277   : > { %v6167_v28 = vpop.trf.xlu1 }
 0x278   : > { %6323 = vxpose.xlu1.b32.cont [13/16] (narrow) %v6167_v28, 8  ;;  %v9239_v28 = vpop.f32.mrf.mxu1 }
 0x27b   : > { %v6172_v29 = vpop.trf.xlu1 }
 0x27c   : > { %6325 = vxpose.xlu1.b32.cont [14/16] (narrow) %v6172_v29, 8 }
 0x27f   : > { %v6177_v50 = vpop.trf.xlu1 }
 0x280   : > { %6327 = vxpose.xlu1.b32.cont [15/16] (narrow) %v6177_v50, 8 }
 0x283   : > { %v6182_v51 = vpop.trf.xlu1 }
 0x284   : > { %6329 = vxpose.xlu1.b32.end [16/16] (narrow) %v6182_v51, 8  ;;  %v6293_v61 = vpop.trf.xlu0  ;;  %v9241_v51 = vpop.f32.mrf.mxu1 }
 0x285   : > { %6500 = vxpose.xlu0.b32.start.end [1/1] (short) %v6499_v47, 128  ;;  %v6297_v3 = vunpack.i.h.bf16 %v6293_v61  ;;  %v6294_v4 = vunpack.i.l.bf16 %v6293_v61 }
 0x287   : > { %v6256_v59 = vpop.trf.xlu1  ;;  %v9204_v56 = vpack.c.bf16 %v6297_v3, %v5821_v53  ;;  %v9206_v57 = vpack.c.bf16 %v6294_v4, %v5818_v54  ;;  %v7451_v53 = vpack.i.bf16 %v9241_v51, %v9237_v22 }
 0x288   : > { %v6260_v62 = vunpack.i.h.bf16 %v6256_v59  ;;  %v6257_v63 = vunpack.i.l.bf16 %v6256_v59  ;;  %6418 = vxpose.xlu1.b32.start.end [1/1] (short) %v6417_v38, 128 }
 0x28a   : > { %v9197_v5 = vpack.c.bf16 %v6260_v62, %v5784_v55  ;;  %v9199_v6 = vpack.c.bf16 %v6257_v63, %v5781_v58 }
 0x2c4   : > { %v6330_v47 = vpop.trf.xlu1  ;;  %v6337_v9 = vpop.trf.xlu0 }
 0x2c5   : > { %v6334_v10 = vunpack.i.h.bf16 %v6330_v47  ;;  %v6331_v11 = vunpack.i.l.bf16 %v6330_v47  ;;  %6582 = vxpose.xlu1.b32.start.end [1/1] (short) %v6581_v8, 128  ;;  %6664 = vxpose.xlu0.b32.start [1/16] (narrow) %v6337_v9, 8 }
 0x2c7   : > { %v9211_v12 = vpack.c.bf16 %v6334_v10, %v5858_v42  ;;  %v9213_v33 = vpack.c.bf16 %v6331_v11, %v5855_v46 }
 0x2c8   : > { %v6342_v37 = vpop.trf.xlu0 }
 0x2c9   : > { %6666 = vxpose.xlu0.b32.cont [2/16] (narrow) %v6342_v37, 8 }
 0x2cc   : > { %v6347_v38 = vpop.trf.xlu0 }
 0x2cd   : > { %6668 = vxpose.xlu0.b32.cont [3/16] (narrow) %v6347_v38, 8 }
 0x2d0   : > { %v6352_v13 = vpop.trf.xlu0 }
 0x2d1   : > { %6670 = vxpose.xlu0.b32.cont [4/16] (narrow) %v6352_v13, 8 }
 0x2d4   : > { %v6357_v60 = vpop.trf.xlu0 }
 0x2d5   : > { %6672 = vxpose.xlu0.b32.cont [5/16] (narrow) %v6357_v60, 8 }
 0x2d8   : > { %v6362_v15 = vpop.trf.xlu0 }
 0x2d9   : > { %6674 = vxpose.xlu0.b32.cont [6/16] (narrow) %v6362_v15, 8 }
 0x2dc   : > { %v6367_v2 = vpop.trf.xlu0 }
 0x2dd   : > { %6676 = vxpose.xlu0.b32.cont [7/16] (narrow) %v6367_v2, 8 }
 0x2e0   : > { %v6372_v16 = vpop.trf.xlu0 }
 0x2e1   : > { %6678 = vxpose.xlu0.b32.cont [8/16] (narrow) %v6372_v16, 8 }
 0x2e4   : > { %v6377_v17 = vpop.trf.xlu0 }
 0x2e5   : > { %6680 = vxpose.xlu0.b32.cont [9/16] (narrow) %v6377_v17, 8 }
 0x2e8   : > { %v6382_v19 = vpop.trf.xlu0 }
 0x2e9   : > { %6682 = vxpose.xlu0.b32.cont [10/16] (narrow) %v6382_v19, 8 }
 0x2ec   : > { %v6387_v21 = vpop.trf.xlu0 }
 0x2ed   : > { %6684 = vxpose.xlu0.b32.cont [11/16] (narrow) %v6387_v21, 8 }
 0x2f0   : > { %v6392_v24 = vpop.trf.xlu0 }
 0x2f1   : > { %6686 = vxpose.xlu0.b32.cont [12/16] (narrow) %v6392_v24, 8 }
 0x2f4   : > { %v6397_v31 = vpop.trf.xlu0 }
 0x2f5   : > { %6688 = vxpose.xlu0.b32.cont [13/16] (narrow) %v6397_v31, 8 }
 0x2f8   : > { %v6402_v32 = vpop.trf.xlu0 }
 0x2f9   : > { %6690 = vxpose.xlu0.b32.cont [14/16] (narrow) %v6402_v32, 8  ;;  %v6811_v32 = vpack.i.bf16 %v9219_v23, %v9215_v18 }
 0x2fc   : > { %v6407_v39 = vpop.trf.xlu0 }
 0x2fd   : > { %6692 = vxpose.xlu0.b32.cont [15/16] (narrow) %v6407_v39, 8 }
 0x300   : > { %v6412_v41 = vpop.trf.xlu0 }
 0x301   : > { %6694 = vxpose.xlu0.b32.end [16/16] (narrow) %v6412_v41, 8 }
 0x304   : > { %v6419_v48 = vpop.trf.xlu1  ;;  %v6501_v49 = vpop.trf.xlu0 }
 0x305   : > { %6701 = vxpose.xlu1.b32.start [1/16] (narrow) %v6419_v48, 8  ;;  %6738 = vxpose.xlu0.b32.start [1/16] (narrow) %v6501_v49, 8 }
 0x308   : > { %v6424_v29 = vpop.trf.xlu1  ;;  %v6506_v50 = vpop.trf.xlu0 }
 0x309   : > { %6703 = vxpose.xlu1.b32.cont [2/16] (narrow) %v6424_v29, 8  ;;  %6740 = vxpose.xlu0.b32.cont [2/16] (narrow) %v6506_v50, 8 }
 0x30c   : > { %v6429_v54 = vpop.trf.xlu1  ;;  %v6511_v55 = vpop.trf.xlu0 }
 0x30d   : > { %6705 = vxpose.xlu1.b32.cont [3/16] (narrow) %v6429_v54, 8  ;;  %6742 = vxpose.xlu0.b32.cont [3/16] (narrow) %v6511_v55, 8 }
 0x310   : > { %v6434_v58 = vpop.trf.xlu1  ;;  %v6516_v59 = vpop.trf.xlu0 }
 0x311   : > { %6707 = vxpose.xlu1.b32.cont [4/16] (narrow) %v6434_v58, 8  ;;  %6744 = vxpose.xlu0.b32.cont [4/16] (narrow) %v6516_v59, 8 }
 0x314   : > { %v6439_v61 = vpop.trf.xlu1  ;;  %v6521_v62 = vpop.trf.xlu0 }
 0x315   : > { %6709 = vxpose.xlu1.b32.cont [5/16] (narrow) %v6439_v61, 8  ;;  %6746 = vxpose.xlu0.b32.cont [5/16] (narrow) %v6521_v62, 8 }
 0x318   : > { %v6444_v63 = vpop.trf.xlu1  ;;  %v6526_v3 = vpop.trf.xlu0 }
 0x319   : > { %6711 = vxpose.xlu1.b32.cont [6/16] (narrow) %v6444_v63, 8  ;;  %6748 = vxpose.xlu0.b32.cont [6/16] (narrow) %v6526_v3, 8 }
 0x31c   : > { %v6449_v4 = vpop.trf.xlu1  ;;  %v6531_v7 = vpop.trf.xlu0 }
 0x31d   : > { %6713 = vxpose.xlu1.b32.cont [7/16] (narrow) %v6449_v4, 8  ;;  %6750 = vxpose.xlu0.b32.cont [7/16] (narrow) %v6531_v7, 8  ;;  %v6975_v4 = vpack.i.bf16 %v9239_v28, %v9235_v45 }
 0x320   : > { %v6454_v8 = vpop.trf.xlu1  ;;  %v6536_v42 = vpop.trf.xlu0 }
 0x321   : > { %6715 = vxpose.xlu1.b32.cont [8/16] (narrow) %v6454_v8, 8  ;;  %6752 = vxpose.xlu0.b32.cont [8/16] (narrow) %v6536_v42, 8  ;;  %v6893_v42 = vpack.i.bf16 %v9229_v52, %v9225_v34 }
 0x324   : > { %v6459_v46 = vpop.trf.xlu1  ;;  %v6541_v47 = vpop.trf.xlu0 }
 0x325   : > { %6717 = vxpose.xlu1.b32.cont [9/16] (narrow) %v6459_v46, 8  ;;  %6754 = vxpose.xlu0.b32.cont [9/16] (narrow) %v6541_v47, 8  ;;  %v1247_v46 = vpop.f32.mrf.mxu1 }
 0x327   : > { %v9257_v47 = vpop.f32.mrf.mxu1 }
 0x328   : > { %v6464_v9 = vpop.trf.xlu1  ;;  %v6546_v10 = vpop.trf.xlu0 }
 0x329   : > { %6719 = vxpose.xlu1.b32.cont [10/16] (narrow) %v6464_v9, 8  ;;  %6756 = vxpose.xlu0.b32.cont [10/16] (narrow) %v6546_v10, 8  ;;  %v1251_v9 = vpop.f32.mrf.mxu1 }
 0x32a   : > { %v7057_v10 = vpack.i.bf16 %v1251_v9, %v1247_v46 }
 0x32c   : > { %v6469_v11 = vpop.trf.xlu1  ;;  %v6551_v37 = vpop.trf.xlu0 }
 0x32d   : > { %6721 = vxpose.xlu1.b32.cont [11/16] (narrow) %v6469_v11, 8  ;;  %6758 = vxpose.xlu0.b32.cont [11/16] (narrow) %v6551_v37, 8 }
 0x330   : > { %v6474_v38 = vpop.trf.xlu1  ;;  %v6556_v13 = vpop.trf.xlu0 }
 0x331   : > { %6723 = vxpose.xlu1.b32.cont [12/16] (narrow) %v6474_v38, 8  ;;  %6760 = vxpose.xlu0.b32.cont [12/16] (narrow) %v6556_v13, 8 }
 0x334   : > { %v6479_v60 = vpop.trf.xlu1  ;;  %v6561_v15 = vpop.trf.xlu0 }
 0x335   : > { %6725 = vxpose.xlu1.b32.cont [13/16] (narrow) %v6479_v60, 8  ;;  %6762 = vxpose.xlu0.b32.cont [13/16] (narrow) %v6561_v15, 8  ;;  %v8769_v15 = vld [vmem:[#allocation6 + $0x160] ss:$24 sps:$4 sm:$0xff]  }
 0x338   : > { %v6484_v2 = vpop.trf.xlu1  ;;  %v6566_v16 = vpop.trf.xlu0 }
 0x339   : > { %6727 = vxpose.xlu1.b32.cont [14/16] (narrow) %v6484_v2, 8  ;;  %6764 = vxpose.xlu0.b32.cont [14/16] (narrow) %v6566_v16, 8  ;;  %v8771_v2 = vld [vmem:[#allocation6 + $0x164] ss:$24 sps:$4 sm:$0xff]  }
 0x33a   : > { %1256 = vmatprep.subr.bf16.mxu0 %v8771_v2 }
 0x33b   : > { %1257 = vmatpush1.bf16.msra.mxu0 %v8769_v15 }
 0x33c   : > { %v6489_v17 = vpop.trf.xlu1  ;;  %v6571_v19 = vpop.trf.xlu0 }
 0x33d   : > { %6729 = vxpose.xlu1.b32.cont [15/16] (narrow) %v6489_v17, 8  ;;  %6766 = vxpose.xlu0.b32.cont [15/16] (narrow) %v6571_v19, 8  ;;  %v8772_v17 = vld [vmem:[#allocation6 + $0x130] ss:$24 sps:$4 sm:$0xff]   ;;  %v8774_v19 = vld [vmem:[#allocation6 + $0x134] ss:$24 sps:$4 sm:$0xff]  }
 0x33e   : > { %1258 = vmatprep.subr.bf16.mxu0 %v8774_v19 }
 0x33f   : > { %1259 = vmatpush1.bf16.msra.mxu0 %v8772_v17 }
 0x340   : > { %v6494_v21 = vpop.trf.xlu1  ;;  %v6576_v24 = vpop.trf.xlu0 }
 0x341   : > { %6731 = vxpose.xlu1.b32.end [16/16] (narrow) %v6494_v21, 8  ;;  %6768 = vxpose.xlu0.b32.end [16/16] (narrow) %v6576_v24, 8  ;;  %v8775_v24 = vld [vmem:[#allocation6 + $0x100] ss:$24 sps:$4 sm:$0xff]  }
 0x344   : > { %v6583_v31 = vpop.trf.xlu1  ;;  %v9247_v39 = vpop.trf.xlu0 }
 0x345   : > { %6775 = vxpose.xlu1.b32.start [1/16] (narrow) %v6583_v31, 8  ;;  %6812 = vxpose.xlu0.b32.start.end [1/1] (short) %v6811_v32, 128  ;;  %v8777_v31 = vld [vmem:[#allocation6 + $0x104] ss:$24 sps:$4 sm:$0xff]  }
 0x346   : > { %1260 = vmatprep.subr.bf16.mxu0 %v8777_v31 }
 0x347   : > { %1261 = vmatpush1.bf16.msra.mxu0 %v8775_v24 }
 0x348   : > { %v6588_v41 = vpop.trf.xlu1 }
 0x349   : > { %6777 = vxpose.xlu1.b32.cont [2/16] (narrow) %v6588_v41, 8  ;;  %v8778_v41 = vld [vmem:[#allocation6 + $0xd0] ss:$24 sps:$4 sm:$0xff]  }
 0x34c   : > { %v6593_v48 = vpop.trf.xlu1 }
 0x34d   : > { %6779 = vxpose.xlu1.b32.cont [3/16] (narrow) %v6593_v48, 8  ;;  %v8780_v48 = vld [vmem:[#allocation6 + $0xd4] ss:$24 sps:$4 sm:$0xff]  }
 0x34e   : > { %1262 = vmatprep.subr.bf16.mxu0 %v8780_v48 }
 0x34f   : > { %1263 = vmatpush1.bf16.msra.mxu0 %v8778_v41 }
 0x350   : > { %v6598_v49 = vpop.trf.xlu1 }
 0x351   : > { %6781 = vxpose.xlu1.b32.cont [4/16] (narrow) %v6598_v49, 8 }
 0x354   : > { %v6603_v29 = vpop.trf.xlu1 }
 0x355   : > { %6783 = vxpose.xlu1.b32.cont [5/16] (narrow) %v6603_v29, 8  ;;  %v8781_v29 = vld [vmem:[#allocation6 + $0xa0] ss:$24 sps:$4 sm:$0xff]  }
 0x358   : > { %v6608_v50 = vpop.trf.xlu1 }
 0x359   : > { %6785 = vxpose.xlu1.b32.cont [6/16] (narrow) %v6608_v50, 8  ;;  %v8783_v50 = vld [vmem:[#allocation6 + $0xa4] ss:$24 sps:$4 sm:$0xff]  }
 0x35a   : > { %1264 = vmatprep.subr.bf16.mxu0 %v8783_v50 }
 0x35b   : > { %1265 = vmatpush1.bf16.msra.mxu0 %v8781_v29 }
 0x35c   : > { %v6613_v54 = vpop.trf.xlu1 }
 0x35d   : > { %6787 = vxpose.xlu1.b32.cont [7/16] (narrow) %v6613_v54, 8 }
 0x360   : > { %v6618_v55 = vpop.trf.xlu1 }
 0x361   : > { %6789 = vxpose.xlu1.b32.cont [8/16] (narrow) %v6618_v55, 8  ;;  %v8784_v55 = vld [vmem:[#allocation6 + $0x70] ss:$24 sps:$4 sm:$0xff]  }
 0x364   : > { %v6623_v58 = vpop.trf.xlu1 }
 0x365   : > { %6791 = vxpose.xlu1.b32.cont [9/16] (narrow) %v6623_v58, 8  ;;  %v8786_v58 = vld [vmem:[#allocation6 + $0x74] ss:$24 sps:$4 sm:$0xff]  }
 0x366   : > { %1266 = vmatprep.subr.bf16.mxu0 %v8786_v58  ;;  %v6696_v58 = vunpack.i.l.bf16 %v9247_v39 }
 0x367   : > { %1267 = vmatpush1.bf16.msra.mxu0 %v8784_v55  ;;  %v6699_v55 = vunpack.i.h.bf16 %v9247_v39 }
 0x368   : > { %v6628_v18 = vpop.trf.xlu1 }
 0x369   : > { %6793 = vxpose.xlu1.b32.cont [10/16] (narrow) %v6628_v18, 8 }
 0x36c   : > { %v6633_v23 = vpop.trf.xlu1 }
 0x36d   : > { %6795 = vxpose.xlu1.b32.cont [11/16] (narrow) %v6633_v23, 8  ;;  %v8787_v23 = vld [vmem:[#allocation6 + $0x40] ss:$24 sps:$4 sm:$0xff]  }
 0x370   : > { %v6638_v59 = vpop.trf.xlu1 }
 0x371   : > { %6797 = vxpose.xlu1.b32.cont [12/16] (narrow) %v6638_v59, 8  ;;  %v8789_v59 = vld [vmem:[#allocation6 + $0x44] ss:$24 sps:$4 sm:$0xff]  }
 0x372   : > { %1268 = vmatprep.subr.bf16.mxu0 %v8789_v59 }
 0x373   : > { %1269 = vmatpush1.bf16.msra.mxu0 %v8787_v23 }
 0x374   : > { %v6643_v61 = vpop.trf.xlu1 }
 0x375   : > { %6799 = vxpose.xlu1.b32.cont [13/16] (narrow) %v6643_v61, 8 }
 0x378   : > { %v6648_v62 = vpop.trf.xlu1 }
 0x379   : > { %6801 = vxpose.xlu1.b32.cont [14/16] (narrow) %v6648_v62, 8  ;;  %v8790_v62 = vld [vmem:[#allocation6 + $0x10] ss:$24 sps:$4 sm:$0xff]  }
 0x37c   : > { %v6653_v63 = vpop.trf.xlu1 }
 0x37d   : > { %6803 = vxpose.xlu1.b32.cont [15/16] (narrow) %v6653_v63, 8  ;;  %v8792_v63 = vld [vmem:[#allocation6 + $0x14] ss:$24 sps:$4 sm:$0xff]  }
 0x37e   : > { %1270 = vmatprep.subr.bf16.mxu0 %v8792_v63 }
 0x37f   : > { %1271 = vmatpush1.bf16.msra.mxu0 %v8790_v62 }
 0x380   : > { %v6658_v3 = vpop.trf.xlu1 }
 0x381   : > { %6805 = vxpose.xlu1.b32.end [16/16] (narrow) %v6658_v3, 8  ;;  %v9251_v7 = vpop.trf.xlu0 }
 0x382   : > { %6976 = vxpose.xlu0.b32.start.end [1/1] (short) %v6975_v4, 128  ;;  %1289 = vmatmul.mubr.bf16.vlgmr.msra.gmra.mxu0 %v9091_v1 }
 0x383   : > { %1298 = vmatprep.mubr.bf16.mxu0 %v8928_v0 }
 0x384   : > { %v9253_v8 = vpop.trf.xlu1 }
 0x385   : > { %6894 = vxpose.xlu1.b32.start.end [1/1] (short) %v6893_v42, 128 }
 0x38a   : > { %1299 = vmatmul.mubr.bf16.gmra.mxu0 %v9103_v25 }
 0x38b   : > { %1308 = vmatprep.mubr.bf16.mxu0 %v8928_v0 }
 0x392   : > { %1309 = vmatmul.mubr.bf16.gmra.mxu0 %v9096_v14 }
 0x393   : > { %1318 = vmatprep.mubr.bf16.mxu0 %v8928_v0 }
 0x39a   : > { %1319 = vmatmul.mubr.bf16.gmra.mxu0 %v9110_v26 }
 0x39b   : > { %4951 = vmatprep.mubr.bf16.mxu0 %v8928_v0 }
 0x3c1   : > { %v6813_v11 = vpop.trf.xlu0  ;;  %v9259_v37 = vpop.trf.xlu1 }
 0x3c2   : > { %7058 = vxpose.xlu1.b32.start.end [1/1] (short) %v7057_v10, 128  ;;  %7140 = vxpose.xlu0.b32.start [1/16] (narrow) %v6813_v11, 8  ;;  %v6810_v22 = vunpack.i.h.bf16 %v9259_v37  ;;  %v6807_v51 = vunpack.i.l.bf16 %v9259_v37 }
 0x3c5   : > { %v6818_v45 = vpop.trf.xlu0 }
 0x3c6   : > { %7142 = vxpose.xlu0.b32.cont [2/16] (narrow) %v6818_v45, 8 }
 0x3c9   : > { %v6823_v28 = vpop.trf.xlu0 }
 0x3ca   : > { %7144 = vxpose.xlu0.b32.cont [3/16] (narrow) %v6823_v28, 8 }
 0x3cd   : > { %v6828_v38 = vpop.trf.xlu0 }
 0x3ce   : > { %7146 = vxpose.xlu0.b32.cont [4/16] (narrow) %v6828_v38, 8 }
 0x3d1   : > { %v6833_v13 = vpop.trf.xlu0 }
 0x3d2   : > { %7148 = vxpose.xlu0.b32.cont [5/16] (narrow) %v6833_v13, 8 }
 0x3d5   : > { %v6838_v60 = vpop.trf.xlu0 }
 0x3d6   : > { %7150 = vxpose.xlu0.b32.cont [6/16] (narrow) %v6838_v60, 8 }
 0x3d9   : > { %v6843_v34 = vpop.trf.xlu0 }
 0x3da   : > { %7152 = vxpose.xlu0.b32.cont [7/16] (narrow) %v6843_v34, 8 }
 0x3dd   : > { %v6848_v52 = vpop.trf.xlu0 }
 0x3de   : > { %7154 = vxpose.xlu0.b32.cont [8/16] (narrow) %v6848_v52, 8 }
 0x3e1   : > { %v6853_v16 = vpop.trf.xlu0 }
 0x3e2   : > { %7156 = vxpose.xlu0.b32.cont [9/16] (narrow) %v6853_v16, 8 }
 0x3e5   : > { %v6858_v21 = vpop.trf.xlu0 }
 0x3e6   : > { %7158 = vxpose.xlu0.b32.cont [10/16] (narrow) %v6858_v21, 8 }
 0x3e9   : > { %v6863_v32 = vpop.trf.xlu0 }
 0x3ea   : > { %7160 = vxpose.xlu0.b32.cont [11/16] (narrow) %v6863_v32, 8 }
 0x3ed   : > { %v6868_v49 = vpop.trf.xlu0 }
 0x3ee   : > { %7162 = vxpose.xlu0.b32.cont [12/16] (narrow) %v6868_v49, 8 }
 0x3f1   : > { %v6873_v54 = vpop.trf.xlu0 }
 0x3f2   : > { %7164 = vxpose.xlu0.b32.cont [13/16] (narrow) %v6873_v54, 8 }
 0x3f5   : > { %v6878_v18 = vpop.trf.xlu0 }
 0x3f6   : > { %7166 = vxpose.xlu0.b32.cont [14/16] (narrow) %v6878_v18, 8 }
 0x3f9   : > { %v6883_v61 = vpop.trf.xlu0 }
 0x3fa   : > { %7168 = vxpose.xlu0.b32.cont [15/16] (narrow) %v6883_v61, 8 }
 0x3fd   : > { %v6888_v3 = vpop.trf.xlu0 }
 0x3fe   : > { %7170 = vxpose.xlu0.b32.end [16/16] (narrow) %v6888_v3, 8 }
 0x401   : > { %v6895_v4 = vpop.trf.xlu1  ;;  %v6977_v42 = vpop.trf.xlu0 }
 0x402   : > { %7177 = vxpose.xlu1.b32.start [1/16] (narrow) %v6895_v4, 8  ;;  %7214 = vxpose.xlu0.b32.start [1/16] (narrow) %v6977_v42, 8 }
 0x405   : > { %v6900_v46 = vpop.trf.xlu1  ;;  %v6982_v9 = vpop.trf.xlu0 }
 0x406   : > { %7179 = vxpose.xlu1.b32.cont [2/16] (narrow) %v6900_v46, 8  ;;  %7216 = vxpose.xlu0.b32.cont [2/16] (narrow) %v6982_v9, 8 }
 0x409   : > { %v6905_v10 = vpop.trf.xlu1  ;;  %v6987_v11 = vpop.trf.xlu0 }
 0x40a   : > { %7181 = vxpose.xlu1.b32.cont [3/16] (narrow) %v6905_v10, 8  ;;  %7218 = vxpose.xlu0.b32.cont [3/16] (narrow) %v6987_v11, 8 }
 0x40d   : > { %v6910_v45 = vpop.trf.xlu1  ;;  %v6992_v28 = vpop.trf.xlu0 }
 0x40e   : > { %7183 = vxpose.xlu1.b32.cont [4/16] (narrow) %v6910_v45, 8  ;;  %7220 = vxpose.xlu0.b32.cont [4/16] (narrow) %v6992_v28, 8 }
 0x411   : > { %v6915_v1 = vpop.trf.xlu1  ;;  %v6997_v38 = vpop.trf.xlu0 }
 0x412   : > { %7185 = vxpose.xlu1.b32.cont [5/16] (narrow) %v6915_v1, 8  ;;  %7222 = vxpose.xlu0.b32.cont [5/16] (narrow) %v6997_v38, 8 }
 0x415   : > { %v6920_v13 = vpop.trf.xlu1  ;;  %v7002_v60 = vpop.trf.xlu0 }
 0x416   : > { %7187 = vxpose.xlu1.b32.cont [6/16] (narrow) %v6920_v13, 8  ;;  %7224 = vxpose.xlu0.b32.cont [6/16] (narrow) %v7002_v60, 8  ;;  %v6773_v13 = vunpack.i.h.bf16 %v9251_v7  ;;  %v6770_v60 = vunpack.i.l.bf16 %v9251_v7 }
 0x419   : > { %v6925_v25 = vpop.trf.xlu1  ;;  %v7007_v34 = vpop.trf.xlu0 }
 0x41a   : > { %7189 = vxpose.xlu1.b32.cont [7/16] (narrow) %v6925_v25, 8  ;;  %7226 = vxpose.xlu0.b32.cont [7/16] (narrow) %v7007_v34, 8  ;;  %v6736_v25 = vunpack.i.h.bf16 %v9253_v8  ;;  %v6733_v34 = vunpack.i.l.bf16 %v9253_v8 }
 0x41d   : > { %v6930_v52 = vpop.trf.xlu1  ;;  %v7012_v15 = vpop.trf.xlu0 }
 0x41e   : > { %7191 = vxpose.xlu1.b32.cont [8/16] (narrow) %v6930_v52, 8  ;;  %7228 = vxpose.xlu0.b32.cont [8/16] (narrow) %v7012_v15, 8 }
 0x421   : > { %v6935_v14 = vpop.trf.xlu1  ;;  %v7017_v2 = vpop.trf.xlu0 }
 0x422   : > { %7193 = vxpose.xlu1.b32.cont [9/16] (narrow) %v6935_v14, 8  ;;  %7230 = vxpose.xlu0.b32.cont [9/16] (narrow) %v7017_v2, 8 }
 0x425   : > { %v6940_v16 = vpop.trf.xlu1  ;;  %v7022_v17 = vpop.trf.xlu0 }
 0x426   : > { %7195 = vxpose.xlu1.b32.cont [10/16] (narrow) %v6940_v16, 8  ;;  %7232 = vxpose.xlu0.b32.cont [10/16] (narrow) %v7022_v17, 8 }
 0x429   : > { %v6945_v19 = vpop.trf.xlu1  ;;  %v7027_v21 = vpop.trf.xlu0 }
 0x42a   : > { %7197 = vxpose.xlu1.b32.cont [11/16] (narrow) %v6945_v19, 8  ;;  %7234 = vxpose.xlu0.b32.cont [11/16] (narrow) %v7027_v21, 8 }
 0x42d   : > { %v6950_v26 = vpop.trf.xlu1  ;;  %v7032_v24 = vpop.trf.xlu0 }
 0x42e   : > { %7199 = vxpose.xlu1.b32.cont [12/16] (narrow) %v6950_v26, 8  ;;  %7236 = vxpose.xlu0.b32.cont [12/16] (narrow) %v7032_v24, 8  ;;  %v1253_v26 = vpop.f32.mrf.mxu1 }
 0x42f   : > { %v7533_v24 = vpack.i.bf16 %v1253_v26, %v9257_v47 }
 0x431   : > { %v6955_v31 = vpop.trf.xlu1  ;;  %v7037_v32 = vpop.trf.xlu0 }
 0x432   : > { %7201 = vxpose.xlu1.b32.cont [13/16] (narrow) %v6955_v31, 8  ;;  %7238 = vxpose.xlu0.b32.cont [13/16] (narrow) %v7037_v32, 8 }
 0x435   : > { %v6960_v41 = vpop.trf.xlu1  ;;  %v7042_v48 = vpop.trf.xlu0 }
 0x436   : > { %7203 = vxpose.xlu1.b32.cont [14/16] (narrow) %v6960_v41, 8  ;;  %7240 = vxpose.xlu0.b32.cont [14/16] (narrow) %v7042_v48, 8 }
 0x439   : > { %v6965_v49 = vpop.trf.xlu1  ;;  %v7047_v29 = vpop.trf.xlu0 }
 0x43a   : > { %7205 = vxpose.xlu1.b32.cont [15/16] (narrow) %v6965_v49, 8  ;;  %7242 = vxpose.xlu0.b32.cont [15/16] (narrow) %v7047_v29, 8 }
 0x43d   : > { %v6970_v50 = vpop.trf.xlu1  ;;  %v7052_v54 = vpop.trf.xlu0 }
 0x43e   : > { %7207 = vxpose.xlu1.b32.end [16/16] (narrow) %v6970_v50, 8  ;;  %7244 = vxpose.xlu0.b32.end [16/16] (narrow) %v7052_v54, 8 }
 0x441   : > { %v7059_v18 = vpop.trf.xlu1  ;;  %v7171_v23 = vpop.trf.xlu0 }
 0x442   : > { %v7175_v59 = vunpack.i.h.bf16 %v7171_v23  ;;  %v7172_v61 = vunpack.i.l.bf16 %v7171_v23  ;;  %7251 = vxpose.xlu1.b32.start [1/16] (narrow) %v7059_v18, 8  ;;  %7288 = vxpose.xlu0.b32.start.end [1/1] (short) %v7287_v30, 128 }
 0x444   : > { %v9271_v63 = vpack.c.bf16 %v7175_v59, %v6699_v55  ;;  %v9273_v3 = vpack.c.bf16 %v7172_v61, %v6696_v58  ;;  %v9303_v55 = vpop.f32.mrf.mxu0 }
 0x445   : > { %v7064_v62 = vpop.trf.xlu1 }
 0x446   : > { %7253 = vxpose.xlu1.b32.cont [2/16] (narrow) %v7064_v62, 8  ;;  %v9305_v18 = vpop.f32.mrf.mxu0 }
 0x448   : > { %v9307_v59 = vpop.f32.mrf.mxu0 }
 0x449   : > { %v7069_v4 = vpop.trf.xlu1 }
 0x44a   : > { %7255 = vxpose.xlu1.b32.cont [3/16] (narrow) %v7069_v4, 8  ;;  %v9309_v62 = vpop.f32.mrf.mxu0 }
 0x44b   : > { %v8239_v4 = vpack.i.bf16 %v9309_v62, %v9305_v18 }
 0x44d   : > { %v7074_v42 = vpop.trf.xlu1 }
 0x44e   : > { %7257 = vxpose.xlu1.b32.cont [4/16] (narrow) %v7074_v42, 8 }
 0x451   : > { %v7079_v39 = vpop.trf.xlu1 }
 0x452   : > { %7259 = vxpose.xlu1.b32.cont [5/16] (narrow) %v7079_v39, 8 }
 0x455   : > { %v7084_v46 = vpop.trf.xlu1 }
 0x456   : > { %7261 = vxpose.xlu1.b32.cont [6/16] (narrow) %v7084_v46, 8  ;;  %v9313_v46 = vpop.f32.mrf.mxu0 }
 0x459   : > { %v7089_v9 = vpop.trf.xlu1 }
 0x45a   : > { %7263 = vxpose.xlu1.b32.cont [7/16] (narrow) %v7089_v9, 8 }
 0x45d   : > { %v7094_v10 = vpop.trf.xlu1 }
 0x45e   : > { %7265 = vxpose.xlu1.b32.cont [8/16] (narrow) %v7094_v10, 8  ;;  %v9315_v10 = vpop.f32.mrf.mxu0 }
 0x461   : > { %v7099_v11 = vpop.trf.xlu1 }
 0x462   : > { %7267 = vxpose.xlu1.b32.cont [9/16] (narrow) %v7099_v11, 8  ;;  %v9317_v11 = vpop.f32.mrf.mxu0 }
 0x465   : > { %v7104_v45 = vpop.trf.xlu1 }
 0x466   : > { %7269 = vxpose.xlu1.b32.cont [10/16] (narrow) %v7104_v45, 8 }
 0x469   : > { %v7109_v28 = vpop.trf.xlu1 }
 0x46a   : > { %7271 = vxpose.xlu1.b32.cont [11/16] (narrow) %v7109_v28, 8  ;;  %v9319_v28 = vpop.f32.mrf.mxu0 }
 0x46d   : > { %v7114_v20 = vpop.trf.xlu1 }
 0x46e   : > { %7273 = vxpose.xlu1.b32.cont [12/16] (narrow) %v7114_v20, 8  ;;  %v8321_v20 = vpack.i.bf16 %v9319_v28, %v9315_v10 }
 0x471   : > { %v7119_v27 = vpop.trf.xlu1 }
 0x472   : > { %7275 = vxpose.xlu1.b32.cont [13/16] (narrow) %v7119_v27, 8  ;;  %v9323_v27 = vpop.f32.mrf.mxu0 }
 0x475   : > { %v7124_v30 = vpop.trf.xlu1 }
 0x476   : > { %7277 = vxpose.xlu1.b32.cont [14/16] (narrow) %v7124_v30, 8 }
 0x479   : > { %v7129_v1 = vpop.trf.xlu1 }
 0x47a   : > { %7279 = vxpose.xlu1.b32.cont [15/16] (narrow) %v7129_v1, 8 }
 0x47d   : > { %v7134_v38 = vpop.trf.xlu1 }
 0x47e   : > { %7281 = vxpose.xlu1.b32.end [16/16] (narrow) %v7134_v38, 8  ;;  %v7245_v15 = vpop.trf.xlu0  ;;  %v9325_v38 = vpop.f32.mrf.mxu0 }
 0x47f   : > { %7452 = vxpose.xlu0.b32.start.end [1/1] (short) %v7451_v53, 128  ;;  %v7249_v16 = vunpack.i.h.bf16 %v7245_v15  ;;  %v7246_v17 = vunpack.i.l.bf16 %v7245_v15 }
 0x481   : > { %v7208_v52 = vpop.trf.xlu1  ;;  %v9292_v7 = vpack.c.bf16 %v7249_v16, %v6773_v13  ;;  %v9294_v8 = vpack.c.bf16 %v7246_v17, %v6770_v60  ;;  %v9327_v13 = vpop.f32.mrf.mxu0 }
 0x482   : > { %v7212_v14 = vunpack.i.h.bf16 %v7208_v52  ;;  %v7209_v2 = vunpack.i.l.bf16 %v7208_v52  ;;  %7370 = vxpose.xlu1.b32.start.end [1/1] (short) %v7369_v44, 128 }
 0x484   : > { %v9285_v19 = vpack.c.bf16 %v7212_v14, %v6736_v25  ;;  %v9287_v21 = vpack.c.bf16 %v7209_v2, %v6733_v34  ;;  %v9329_v34 = vpop.f32.mrf.mxu0 }
 0x485   : > { %v8403_v52 = vpack.i.bf16 %v9329_v34, %v9325_v38 }
 0x4be   : > { %v7282_v53 = vpop.trf.xlu1  ;;  %v7289_v31 = vpop.trf.xlu0 }
 0x4bf   : > { %v7286_v32 = vunpack.i.h.bf16 %v7282_v53  ;;  %v7283_v41 = vunpack.i.l.bf16 %v7282_v53  ;;  %7534 = vxpose.xlu1.b32.start.end [1/1] (short) %v7533_v24, 128  ;;  %7616 = vxpose.xlu0.b32.start [1/16] (narrow) %v7289_v31, 8 }
 0x4c1   : > { %v9299_v48 = vpack.c.bf16 %v7286_v32, %v6810_v22  ;;  %v9301_v40 = vpack.c.bf16 %v7283_v41, %v6807_v51 }
 0x4c2   : > { %v7294_v43 = vpop.trf.xlu0 }
 0x4c3   : > { %7618 = vxpose.xlu0.b32.cont [2/16] (narrow) %v7294_v43, 8 }
 0x4c6   : > { %v7299_v44 = vpop.trf.xlu0 }
 0x4c7   : > { %7620 = vxpose.xlu0.b32.cont [3/16] (narrow) %v7299_v44, 8 }
 0x4ca   : > { %v7304_v49 = vpop.trf.xlu0 }
 0x4cb   : > { %7622 = vxpose.xlu0.b32.cont [4/16] (narrow) %v7304_v49, 8 }
 0x4ce   : > { %v7309_v47 = vpop.trf.xlu0 }
 0x4cf   : > { %7624 = vxpose.xlu0.b32.cont [5/16] (narrow) %v7309_v47, 8 }
 0x4d2   : > { %v7314_v29 = vpop.trf.xlu0 }
 0x4d3   : > { %7626 = vxpose.xlu0.b32.cont [6/16] (narrow) %v7314_v29, 8 }
 0x4d6   : > { %v7319_v37 = vpop.trf.xlu0 }
 0x4d7   : > { %7628 = vxpose.xlu0.b32.cont [7/16] (narrow) %v7319_v37, 8 }
 0x4da   : > { %v7324_v50 = vpop.trf.xlu0 }
 0x4db   : > { %7630 = vxpose.xlu0.b32.cont [8/16] (narrow) %v7324_v50, 8 }
 0x4de   : > { %v7329_v54 = vpop.trf.xlu0 }
 0x4df   : > { %7632 = vxpose.xlu0.b32.cont [9/16] (narrow) %v7329_v54, 8 }
 0x4e2   : > { %v7334_v58 = vpop.trf.xlu0 }
 0x4e3   : > { %7634 = vxpose.xlu0.b32.cont [10/16] (narrow) %v7334_v58, 8 }
 0x4e6   : > { %v7339_v23 = vpop.trf.xlu0 }
 0x4e7   : > { %7636 = vxpose.xlu0.b32.cont [11/16] (narrow) %v7339_v23, 8 }
 0x4ea   : > { %v7344_v61 = vpop.trf.xlu0 }
 0x4eb   : > { %7638 = vxpose.xlu0.b32.cont [12/16] (narrow) %v7344_v61, 8 }
 0x4ee   : > { %v7349_v42 = vpop.trf.xlu0 }
 0x4ef   : > { %7640 = vxpose.xlu0.b32.cont [13/16] (narrow) %v7349_v42, 8 }
 0x4f2   : > { %v7354_v39 = vpop.trf.xlu0 }
 0x4f3   : > { %7642 = vxpose.xlu0.b32.cont [14/16] (narrow) %v7354_v39, 8 }
 0x4f6   : > { %v7359_v9 = vpop.trf.xlu0 }
 0x4f7   : > { %7644 = vxpose.xlu0.b32.cont [15/16] (narrow) %v7359_v9, 8 }
 0x4fa   : > { %v7364_v45 = vpop.trf.xlu0 }
 0x4fb   : > { %7646 = vxpose.xlu0.b32.end [16/16] (narrow) %v7364_v45, 8 }
 0x4fe   : > { %v7371_v30 = vpop.trf.xlu1  ;;  %v7453_v1 = vpop.trf.xlu0 }
 0x4ff   : > { %7653 = vxpose.xlu1.b32.start [1/16] (narrow) %v7371_v30, 8  ;;  %7690 = vxpose.xlu0.b32.start [1/16] (narrow) %v7453_v1, 8  ;;  %v7763_v1 = vpack.i.bf16 %v9307_v59, %v9303_v55 }
 0x502   : > { %v7376_v60 = vpop.trf.xlu1  ;;  %v7458_v25 = vpop.trf.xlu0 }
 0x503   : > { %7655 = vxpose.xlu1.b32.cont [2/16] (narrow) %v7376_v60, 8  ;;  %7692 = vxpose.xlu0.b32.cont [2/16] (narrow) %v7458_v25, 8 }
 0x506   : > { %v7381_v15 = vpop.trf.xlu1  ;;  %v7463_v14 = vpop.trf.xlu0 }
 0x507   : > { %7657 = vxpose.xlu1.b32.cont [3/16] (narrow) %v7381_v15, 8  ;;  %7694 = vxpose.xlu0.b32.cont [3/16] (narrow) %v7463_v14, 8 }
 0x50a   : > { %v7386_v2 = vpop.trf.xlu1  ;;  %v7468_v16 = vpop.trf.xlu0 }
 0x50b   : > { %7659 = vxpose.xlu1.b32.cont [4/16] (narrow) %v7386_v2, 8  ;;  %7696 = vxpose.xlu0.b32.cont [4/16] (narrow) %v7468_v16, 8 }
 0x50e   : > { %v7391_v17 = vpop.trf.xlu1  ;;  %v7473_v26 = vpop.trf.xlu0 }
 0x50f   : > { %7661 = vxpose.xlu1.b32.cont [5/16] (narrow) %v7391_v17, 8  ;;  %7698 = vxpose.xlu0.b32.cont [5/16] (narrow) %v7473_v26, 8 }
 0x512   : > { %v7396_v24 = vpop.trf.xlu1  ;;  %v7478_v22 = vpop.trf.xlu0 }
 0x513   : > { %7663 = vxpose.xlu1.b32.cont [6/16] (narrow) %v7396_v24, 8  ;;  %7700 = vxpose.xlu0.b32.cont [6/16] (narrow) %v7478_v22, 8 }
 0x516   : > { %v7401_v51 = vpop.trf.xlu1  ;;  %v7483_v53 = vpop.trf.xlu0 }
 0x517   : > { %7665 = vxpose.xlu1.b32.cont [7/16] (narrow) %v7401_v51, 8  ;;  %7702 = vxpose.xlu0.b32.cont [7/16] (narrow) %v7483_v53, 8 }
 0x51a   : > { %v7406_v31 = vpop.trf.xlu1  ;;  %v7488_v32 = vpop.trf.xlu0 }
 0x51b   : > { %7667 = vxpose.xlu1.b32.cont [8/16] (narrow) %v7406_v31, 8  ;;  %7704 = vxpose.xlu0.b32.cont [8/16] (narrow) %v7488_v32, 8 }
 0x51e   : > { %v7411_v41 = vpop.trf.xlu1  ;;  %v7493_v43 = vpop.trf.xlu0 }
 0x51f   : > { %7669 = vxpose.xlu1.b32.cont [9/16] (narrow) %v7411_v41, 8  ;;  %7706 = vxpose.xlu0.b32.cont [9/16] (narrow) %v7493_v43, 8  ;;  %v7927_v41 = vpack.i.bf16 %v9327_v13, %v9323_v27 }
 0x522   : > { %v7416_v44 = vpop.trf.xlu1  ;;  %v7498_v49 = vpop.trf.xlu0 }
 0x523   : > { %7671 = vxpose.xlu1.b32.cont [10/16] (narrow) %v7416_v44, 8  ;;  %7708 = vxpose.xlu0.b32.cont [10/16] (narrow) %v7498_v49, 8  ;;  %v7845_v49 = vpack.i.bf16 %v9317_v11, %v9313_v46 }
 0x526   : > { %v7421_v47 = vpop.trf.xlu1  ;;  %v7503_v29 = vpop.trf.xlu0 }
 0x527   : > { %7673 = vxpose.xlu1.b32.cont [11/16] (narrow) %v7421_v47, 8  ;;  %7710 = vxpose.xlu0.b32.cont [11/16] (narrow) %v7503_v29, 8  ;;  %v1320_v47 = vpop.f32.mrf.mxu0 }
 0x529   : > { %v9345_v29 = vpop.f32.mrf.mxu0 }
 0x52a   : > { %v7426_v37 = vpop.trf.xlu1  ;;  %v7508_v50 = vpop.trf.xlu0 }
 0x52b   : > { %7675 = vxpose.xlu1.b32.cont [12/16] (narrow) %v7426_v37, 8  ;;  %7712 = vxpose.xlu0.b32.cont [12/16] (narrow) %v7508_v50, 8  ;;  %v1324_v37 = vpop.f32.mrf.mxu0 }
 0x52c   : > { %v8009_v50 = vpack.i.bf16 %v1324_v37, %v1320_v47 }
 0x52e   : > { %v7431_v54 = vpop.trf.xlu1  ;;  %v7513_v58 = vpop.trf.xlu0 }
 0x52f   : > { %7677 = vxpose.xlu1.b32.cont [13/16] (narrow) %v7431_v54, 8  ;;  %7714 = vxpose.xlu0.b32.cont [13/16] (narrow) %v7513_v58, 8 }
 0x532   : > { %v7436_v23 = vpop.trf.xlu1  ;;  %v7518_v61 = vpop.trf.xlu0 }
 0x533   : > { %7679 = vxpose.xlu1.b32.cont [14/16] (narrow) %v7436_v23, 8  ;;  %7716 = vxpose.xlu0.b32.cont [14/16] (narrow) %v7518_v61, 8 }
 0x536   : > { %v7441_v42 = vpop.trf.xlu1  ;;  %v7523_v39 = vpop.trf.xlu0 }
 0x537   : > { %7681 = vxpose.xlu1.b32.cont [15/16] (narrow) %v7441_v42, 8  ;;  %7718 = vxpose.xlu0.b32.cont [15/16] (narrow) %v7523_v39, 8 }
 0x53a   : > { %v7446_v9 = vpop.trf.xlu1  ;;  %v7528_v45 = vpop.trf.xlu0 }
 0x53b   : > { %7683 = vxpose.xlu1.b32.end [16/16] (narrow) %v7446_v9, 8  ;;  %7720 = vxpose.xlu0.b32.end [16/16] (narrow) %v7528_v45, 8 }
 0x53e   : > { %v7535_v30 = vpop.trf.xlu1  ;;  %v9335_v60 = vpop.trf.xlu0 }
 0x53f   : > { %7727 = vxpose.xlu1.b32.start [1/16] (narrow) %v7535_v30, 8  ;;  %7764 = vxpose.xlu0.b32.start.end [1/1] (short) %v7763_v1, 128 }
 0x542   : > { %v7540_v25 = vpop.trf.xlu1 }
 0x543   : > { %7729 = vxpose.xlu1.b32.cont [2/16] (narrow) %v7540_v25, 8 }
 0x546   : > { %v7545_v15 = vpop.trf.xlu1 }
 0x547   : > { %7731 = vxpose.xlu1.b32.cont [3/16] (narrow) %v7545_v15, 8 }
 0x54a   : > { %v7550_v14 = vpop.trf.xlu1 }
 0x54b   : > { %7733 = vxpose.xlu1.b32.cont [4/16] (narrow) %v7550_v14, 8 }
 0x54e   : > { %v7555_v2 = vpop.trf.xlu1 }
 0x54f   : > { %7735 = vxpose.xlu1.b32.cont [5/16] (narrow) %v7555_v2, 8 }
 0x552   : > { %v7560_v16 = vpop.trf.xlu1 }
 0x553   : > { %7737 = vxpose.xlu1.b32.cont [6/16] (narrow) %v7560_v16, 8 }
 0x556   : > { %v7565_v17 = vpop.trf.xlu1 }
 0x557   : > { %7739 = vxpose.xlu1.b32.cont [7/16] (narrow) %v7565_v17, 8 }
 0x55a   : > { %v7570_v26 = vpop.trf.xlu1 }
 0x55b   : > { %7741 = vxpose.xlu1.b32.cont [8/16] (narrow) %v7570_v26, 8 }
 0x55e   : > { %v7575_v24 = vpop.trf.xlu1 }
 0x55f   : > { %7743 = vxpose.xlu1.b32.cont [9/16] (narrow) %v7575_v24, 8 }
 0x562   : > { %v7580_v55 = vpop.trf.xlu1 }
 0x563   : > { %7745 = vxpose.xlu1.b32.cont [10/16] (narrow) %v7580_v55, 8 }
 0x566   : > { %v7585_v59 = vpop.trf.xlu1 }
 0x567   : > { %7747 = vxpose.xlu1.b32.cont [11/16] (narrow) %v7585_v59, 8 }
 0x56a   : > { %v7590_v22 = vpop.trf.xlu1 }
 0x56b   : > { %7749 = vxpose.xlu1.b32.cont [12/16] (narrow) %v7590_v22, 8 }
 0x56e   : > { %v7595_v51 = vpop.trf.xlu1 }
 0x56f   : > { %7751 = vxpose.xlu1.b32.cont [13/16] (narrow) %v7595_v51, 8 }
 0x572   : > { %v7600_v53 = vpop.trf.xlu1 }
 0x573   : > { %7753 = vxpose.xlu1.b32.cont [14/16] (narrow) %v7600_v53, 8 }
 0x576   : > { %v7605_v31 = vpop.trf.xlu1 }
 0x577   : > { %7755 = vxpose.xlu1.b32.cont [15/16] (narrow) %v7605_v31, 8 }
 0x57a   : > { %v7610_v32 = vpop.trf.xlu1 }
 0x57b   : > { %7757 = vxpose.xlu1.b32.end [16/16] (narrow) %v7610_v32, 8  ;;  %v9339_v43 = vpop.trf.xlu0 }
 0x57c   : > { %7928 = vxpose.xlu0.b32.start.end [1/1] (short) %v7927_v41, 128 }
 0x57e   : > { %v9341_v44 = vpop.trf.xlu1 }
 0x57f   : > { %7846 = vxpose.xlu1.b32.start.end [1/1] (short) %v7845_v49, 128 }
 0x5bb   : > { %v7765_v54 = vpop.trf.xlu0  ;;  %v9347_v58 = vpop.trf.xlu1 }
 0x5bc   : > { %8010 = vxpose.xlu1.b32.start.end [1/1] (short) %v8009_v50, 128  ;;  %8092 = vxpose.xlu0.b32.start [1/16] (narrow) %v7765_v54, 8  ;;  %v7762_v38 = vunpack.i.h.bf16 %v9347_v58  ;;  %v7759_v34 = vunpack.i.l.bf16 %v9347_v58 }
 0x5bf   : > { %v7770_v27 = vpop.trf.xlu0 }
 0x5c0   : > { %8094 = vxpose.xlu0.b32.cont [2/16] (narrow) %v7770_v27, 8 }
 0x5c3   : > { %v7775_v13 = vpop.trf.xlu0 }
 0x5c4   : > { %8096 = vxpose.xlu0.b32.cont [3/16] (narrow) %v7775_v13, 8 }
 0x5c7   : > { %v7780_v23 = vpop.trf.xlu0 }
 0x5c8   : > { %8098 = vxpose.xlu0.b32.cont [4/16] (narrow) %v7780_v23, 8 }
 0x5cb   : > { %v7785_v61 = vpop.trf.xlu0 }
 0x5cc   : > { %8100 = vxpose.xlu0.b32.cont [5/16] (narrow) %v7785_v61, 8 }
 0x5cf   : > { %v7790_v42 = vpop.trf.xlu0 }
 0x5d0   : > { %8102 = vxpose.xlu0.b32.cont [6/16] (narrow) %v7790_v42, 8 }
 0x5d3   : > { %v7795_v46 = vpop.trf.xlu0 }
 0x5d4   : > { %8104 = vxpose.xlu0.b32.cont [7/16] (narrow) %v7795_v46, 8 }
 0x5d7   : > { %v7800_v11 = vpop.trf.xlu0 }
 0x5d8   : > { %8106 = vxpose.xlu0.b32.cont [8/16] (narrow) %v7800_v11, 8 }
 0x5db   : > { %v7805_v39 = vpop.trf.xlu0 }
 0x5dc   : > { %8108 = vxpose.xlu0.b32.cont [9/16] (narrow) %v7805_v39, 8 }
 0x5df   : > { %v7810_v9 = vpop.trf.xlu0 }
 0x5e0   : > { %8110 = vxpose.xlu0.b32.cont [10/16] (narrow) %v7810_v9, 8 }
 0x5e3   : > { %v7815_v45 = vpop.trf.xlu0 }
 0x5e4   : > { %8112 = vxpose.xlu0.b32.cont [11/16] (narrow) %v7815_v45, 8 }
 0x5e7   : > { %v7820_v30 = vpop.trf.xlu0 }
 0x5e8   : > { %8114 = vxpose.xlu0.b32.cont [12/16] (narrow) %v7820_v30, 8 }
 0x5eb   : > { %v7825_v1 = vpop.trf.xlu0 }
 0x5ec   : > { %8116 = vxpose.xlu0.b32.cont [13/16] (narrow) %v7825_v1, 8 }
 0x5ef   : > { %v7830_v25 = vpop.trf.xlu0 }
 0x5f0   : > { %8118 = vxpose.xlu0.b32.cont [14/16] (narrow) %v7830_v25, 8 }
 0x5f3   : > { %v7835_v15 = vpop.trf.xlu0 }
 0x5f4   : > { %8120 = vxpose.xlu0.b32.cont [15/16] (narrow) %v7835_v15, 8 }
 0x5f7   : > { %v7840_v14 = vpop.trf.xlu0 }
 0x5f8   : > { %8122 = vxpose.xlu0.b32.end [16/16] (narrow) %v7840_v14, 8  ;;  %v7651_v14 = vunpack.i.h.bf16 %v9335_v60 }
 0x5fb   : > { %v7847_v2 = vpop.trf.xlu1  ;;  %v7929_v16 = vpop.trf.xlu0 }
 0x5fc   : > { %8129 = vxpose.xlu1.b32.start [1/16] (narrow) %v7847_v2, 8  ;;  %8166 = vxpose.xlu0.b32.start [1/16] (narrow) %v7929_v16, 8  ;;  %v7648_v2 = vunpack.i.l.bf16 %v9335_v60 }
 0x5ff   : > { %v7852_v17 = vpop.trf.xlu1  ;;  %v7934_v26 = vpop.trf.xlu0 }
 0x600   : > { %8131 = vxpose.xlu1.b32.cont [2/16] (narrow) %v7852_v17, 8  ;;  %8168 = vxpose.xlu0.b32.cont [2/16] (narrow) %v7934_v26, 8 }
 0x603   : > { %v7857_v24 = vpop.trf.xlu1  ;;  %v7939_v55 = vpop.trf.xlu0 }
 0x604   : > { %8133 = vxpose.xlu1.b32.cont [3/16] (narrow) %v7857_v24, 8  ;;  %8170 = vxpose.xlu0.b32.cont [3/16] (narrow) %v7939_v55, 8 }
 0x607   : > { %v7862_v59 = vpop.trf.xlu1  ;;  %v7944_v22 = vpop.trf.xlu0 }
 0x608   : > { %8135 = vxpose.xlu1.b32.cont [4/16] (narrow) %v7862_v59, 8  ;;  %8172 = vxpose.xlu0.b32.cont [4/16] (narrow) %v7944_v22, 8 }
 0x60b   : > { %v7867_v51 = vpop.trf.xlu1  ;;  %v7949_v53 = vpop.trf.xlu0 }
 0x60c   : > { %8137 = vxpose.xlu1.b32.cont [5/16] (narrow) %v7867_v51, 8  ;;  %8174 = vxpose.xlu0.b32.cont [5/16] (narrow) %v7949_v53, 8 }
 0x60f   : > { %v7872_v31 = vpop.trf.xlu1  ;;  %v7954_v32 = vpop.trf.xlu0 }
 0x610   : > { %8139 = vxpose.xlu1.b32.cont [6/16] (narrow) %v7872_v31, 8  ;;  %8176 = vxpose.xlu0.b32.cont [6/16] (narrow) %v7954_v32, 8 }
 0x613   : > { %v7877_v41 = vpop.trf.xlu1  ;;  %v7959_v49 = vpop.trf.xlu0 }
 0x614   : > { %8141 = vxpose.xlu1.b32.cont [7/16] (narrow) %v7877_v41, 8  ;;  %8178 = vxpose.xlu0.b32.cont [7/16] (narrow) %v7959_v49, 8 }
 0x617   : > { %v7882_v47 = vpop.trf.xlu1  ;;  %v7964_v37 = vpop.trf.xlu0 }
 0x618   : > { %8143 = vxpose.xlu1.b32.cont [8/16] (narrow) %v7882_v47, 8  ;;  %8180 = vxpose.xlu0.b32.cont [8/16] (narrow) %v7964_v37, 8 }
 0x61b   : > { %v7887_v50 = vpop.trf.xlu1  ;;  %v7969_v54 = vpop.trf.xlu0 }
 0x61c   : > { %8145 = vxpose.xlu1.b32.cont [9/16] (narrow) %v7887_v50, 8  ;;  %8182 = vxpose.xlu0.b32.cont [9/16] (narrow) %v7969_v54, 8 }
 0x61f   : > { %v7892_v27 = vpop.trf.xlu1  ;;  %v7974_v13 = vpop.trf.xlu0 }
 0x620   : > { %8147 = vxpose.xlu1.b32.cont [10/16] (narrow) %v7892_v27, 8  ;;  %8184 = vxpose.xlu0.b32.cont [10/16] (narrow) %v7974_v13, 8  ;;  %v7725_v27 = vunpack.i.h.bf16 %v9339_v43  ;;  %v7722_v13 = vunpack.i.l.bf16 %v9339_v43 }
 0x623   : > { %v7897_v23 = vpop.trf.xlu1  ;;  %v7979_v61 = vpop.trf.xlu0 }
 0x624   : > { %8149 = vxpose.xlu1.b32.cont [11/16] (narrow) %v7897_v23, 8  ;;  %8186 = vxpose.xlu0.b32.cont [11/16] (narrow) %v7979_v61, 8  ;;  %v7688_v23 = vunpack.i.h.bf16 %v9341_v44  ;;  %v7685_v61 = vunpack.i.l.bf16 %v9341_v44 }
 0x627   : > { %v7902_v42 = vpop.trf.xlu1  ;;  %v7984_v46 = vpop.trf.xlu0 }
 0x628   : > { %8151 = vxpose.xlu1.b32.cont [12/16] (narrow) %v7902_v42, 8  ;;  %8188 = vxpose.xlu0.b32.cont [12/16] (narrow) %v7984_v46, 8 }
 0x62b   : > { %v7907_v11 = vpop.trf.xlu1  ;;  %v7989_v39 = vpop.trf.xlu0 }
 0x62c   : > { %8153 = vxpose.xlu1.b32.cont [13/16] (narrow) %v7907_v11, 8  ;;  %8190 = vxpose.xlu0.b32.cont [13/16] (narrow) %v7989_v39, 8 }
 0x62f   : > { %v7912_v9 = vpop.trf.xlu1  ;;  %v7994_v45 = vpop.trf.xlu0 }
 0x630   : > { %8155 = vxpose.xlu1.b32.cont [14/16] (narrow) %v7912_v9, 8  ;;  %8192 = vxpose.xlu0.b32.cont [14/16] (narrow) %v7994_v45, 8 }
 0x633   : > { %v7917_v30 = vpop.trf.xlu1  ;;  %v7999_v1 = vpop.trf.xlu0 }
 0x634   : > { %8157 = vxpose.xlu1.b32.cont [15/16] (narrow) %v7917_v30, 8  ;;  %8194 = vxpose.xlu0.b32.cont [15/16] (narrow) %v7999_v1, 8 }
 0x637   : > { %v7922_v25 = vpop.trf.xlu1  ;;  %v8004_v15 = vpop.trf.xlu0 }
 0x638   : > { %8159 = vxpose.xlu1.b32.end [16/16] (narrow) %v7922_v25, 8  ;;  %8196 = vxpose.xlu0.b32.end [16/16] (narrow) %v8004_v15, 8  ;;  %v1326_v25 = vpop.f32.mrf.mxu0 }
 0x639   : > { %v8485_v15 = vpack.i.bf16 %v1326_v25, %v9345_v29 }
 0x63b   : > { %v8011_v16 = vpop.trf.xlu1  ;;  %v8123_v17 = vpop.trf.xlu0 }
 0x63c   : > { %v8127_v26 = vunpack.i.h.bf16 %v8123_v17  ;;  %v8124_v24 = vunpack.i.l.bf16 %v8123_v17  ;;  %8203 = vxpose.xlu1.b32.start [1/16] (narrow) %v8011_v16, 8  ;;  %8240 = vxpose.xlu0.b32.start.end [1/1] (short) %v8239_v4, 128 }
 0x63e   : > { %v9351_v59 = vpack.c.bf16 %v8127_v26, %v7651_v14  ;;  %v9353_v22 = vpack.c.bf16 %v8124_v24, %v7648_v2 }
 0x63f   : > { %v8016_v55 = vpop.trf.xlu1 }
 0x640   : > { %8205 = vxpose.xlu1.b32.cont [2/16] (narrow) %v8016_v55, 8 }
 0x643   : > { %v8021_v51 = vpop.trf.xlu1 }
 0x644   : > { %8207 = vxpose.xlu1.b32.cont [3/16] (narrow) %v8021_v51, 8 }
 0x647   : > { %v8026_v53 = vpop.trf.xlu1 }
 0x648   : > { %8209 = vxpose.xlu1.b32.cont [4/16] (narrow) %v8026_v53, 8 }
 0x64b   : > { %v8031_v60 = vpop.trf.xlu1 }
 0x64c   : > { %8211 = vxpose.xlu1.b32.cont [5/16] (narrow) %v8031_v60, 8 }
 0x64f   : > { %v8036_v31 = vpop.trf.xlu1 }
 0x650   : > { %8213 = vxpose.xlu1.b32.cont [6/16] (narrow) %v8036_v31, 8 }
 0x653   : > { %v8041_v32 = vpop.trf.xlu1 }
 0x654   : > { %8215 = vxpose.xlu1.b32.cont [7/16] (narrow) %v8041_v32, 8 }
 0x657   : > { %v8046_v41 = vpop.trf.xlu1 }
 0x658   : > { %8217 = vxpose.xlu1.b32.cont [8/16] (narrow) %v8046_v41, 8 }
 0x65b   : > { %v8051_v49 = vpop.trf.xlu1 }
 0x65c   : > { %8219 = vxpose.xlu1.b32.cont [9/16] (narrow) %v8051_v49, 8 }
 0x65f   : > { %v8056_v47 = vpop.trf.xlu1 }
 0x660   : > { %8221 = vxpose.xlu1.b32.cont [10/16] (narrow) %v8056_v47, 8 }
 0x663   : > { %v8061_v37 = vpop.trf.xlu1 }
 0x664   : > { %8223 = vxpose.xlu1.b32.cont [11/16] (narrow) %v8061_v37, 8 }
 0x667   : > { %v8066_v18 = vpop.trf.xlu1 }
 0x668   : > { %8225 = vxpose.xlu1.b32.cont [12/16] (narrow) %v8066_v18, 8 }
 0x66b   : > { %v8071_v62 = vpop.trf.xlu1 }
 0x66c   : > { %8227 = vxpose.xlu1.b32.cont [13/16] (narrow) %v8071_v62, 8 }
 0x66f   : > { %v8076_v4 = vpop.trf.xlu1 }
 0x670   : > { %8229 = vxpose.xlu1.b32.cont [14/16] (narrow) %v8076_v4, 8 }
 0x673   : > { %v8081_v50 = vpop.trf.xlu1 }
 0x674   : > { %8231 = vxpose.xlu1.b32.cont [15/16] (narrow) %v8081_v50, 8 }
 0x677   : > { %v8086_v54 = vpop.trf.xlu1 }
 0x678   : > { %8233 = vxpose.xlu1.b32.end [16/16] (narrow) %v8086_v54, 8  ;;  %v8197_v46 = vpop.trf.xlu0 }
 0x679   : > { %8404 = vxpose.xlu0.b32.start.end [1/1] (short) %v8403_v52, 128  ;;  %v8201_v9 = vunpack.i.h.bf16 %v8197_v46  ;;  %v8198_v45 = vunpack.i.l.bf16 %v8197_v46 }
 0x67b   : > { %v8160_v42 = vpop.trf.xlu1  ;;  %v9372_v43 = vpack.c.bf16 %v8201_v9, %v7725_v27  ;;  %v9374_v44 = vpack.c.bf16 %v8198_v45, %v7722_v13 }
 0x67c   : > { %v8164_v11 = vunpack.i.h.bf16 %v8160_v42  ;;  %v8161_v39 = vunpack.i.l.bf16 %v8160_v42  ;;  %8322 = vxpose.xlu1.b32.start.end [1/1] (short) %v8321_v20, 128 }
 0x67e   : > { %v9365_v30 = vpack.c.bf16 %v8164_v11, %v7688_v23  ;;  %v9367_v1 = vpack.c.bf16 %v8161_v39, %v7685_v61 }
 0x6b8   : > { %v8234_v52 = vpop.trf.xlu1  ;;  %v8241_v14 = vpop.trf.xlu0 }
 0x6b9   : > { %v8238_v2 = vunpack.i.h.bf16 %v8234_v52  ;;  %v8235_v16 = vunpack.i.l.bf16 %v8234_v52  ;;  %8486 = vxpose.xlu1.b32.start.end [1/1] (short) %v8485_v15, 128  ;;  %8568 = vxpose.xlu0.b32.start [1/16] (narrow) %v8241_v14, 8 }
 0x6bb   : > { %v9379_v17 = vpack.c.bf16 %v8238_v2, %v7762_v38  ;;  %v9381_v10 = vpack.c.bf16 %v8235_v16, %v7759_v34 }
 0x6bc   : > { %v8246_v28 = vpop.trf.xlu0 }
 0x6bd   : > { %8570 = vxpose.xlu0.b32.cont [2/16] (narrow) %v8246_v28, 8 }
 0x6c0   : > { %v8251_v20 = vpop.trf.xlu0 }
 0x6c1   : > { %8572 = vxpose.xlu0.b32.cont [3/16] (narrow) %v8251_v20, 8 }
 0x6c4   : > { %v8256_v26 = vpop.trf.xlu0 }
 0x6c5   : > { %8574 = vxpose.xlu0.b32.cont [4/16] (narrow) %v8256_v26, 8 }
 0x6c8   : > { %v8261_v29 = vpop.trf.xlu0 }
 0x6c9   : > { %8576 = vxpose.xlu0.b32.cont [5/16] (narrow) %v8261_v29, 8 }
 0x6cc   : > { %v8266_v24 = vpop.trf.xlu0 }
 0x6cd   : > { %8578 = vxpose.xlu0.b32.cont [6/16] (narrow) %v8266_v24, 8 }
 0x6d0   : > { %v8271_v58 = vpop.trf.xlu0 }
 0x6d1   : > { %8580 = vxpose.xlu0.b32.cont [7/16] (narrow) %v8271_v58, 8 }
 0x6d4   : > { %v8276_v55 = vpop.trf.xlu0 }
 0x6d5   : > { %8582 = vxpose.xlu0.b32.cont [8/16] (narrow) %v8276_v55, 8 }
 0x6d8   : > { %v8281_v51 = vpop.trf.xlu0 }
 0x6d9   : > { %8584 = vxpose.xlu0.b32.cont [9/16] (narrow) %v8281_v51, 8 }
 0x6dc   : > { %v8286_v53 = vpop.trf.xlu0 }
 0x6dd   : > { %8586 = vxpose.xlu0.b32.cont [10/16] (narrow) %v8286_v53, 8 }
 0x6e0   : > { %v8291_v60 = vpop.trf.xlu0 }
 0x6e1   : > { %8588 = vxpose.xlu0.b32.cont [11/16] (narrow) %v8291_v60, 8 }
 0x6e4   : > { %v8296_v31 = vpop.trf.xlu0 }
 0x6e5   : > { %8590 = vxpose.xlu0.b32.cont [12/16] (narrow) %v8296_v31, 8 }
 0x6e8   : > { %v8301_v32 = vpop.trf.xlu0 }
 0x6e9   : > { %8592 = vxpose.xlu0.b32.cont [13/16] (narrow) %v8301_v32, 8 }
 0x6ec   : > { %v8306_v41 = vpop.trf.xlu0 }
 0x6ed   : > { %8594 = vxpose.xlu0.b32.cont [14/16] (narrow) %v8306_v41, 8 }
 0x6f0   : > { %v8311_v49 = vpop.trf.xlu0 }
 0x6f1   : > { %8596 = vxpose.xlu0.b32.cont [15/16] (narrow) %v8311_v49, 8 }
 0x6f4   : > { %v8316_v47 = vpop.trf.xlu0 }
 0x6f5   : > { %8598 = vxpose.xlu0.b32.end [16/16] (narrow) %v8316_v47, 8 }
 0x6f8   : > { %v8323_v37 = vpop.trf.xlu1  ;;  %v8405_v18 = vpop.trf.xlu0 }
 0x6f9   : > { %8605 = vxpose.xlu1.b32.start [1/16] (narrow) %v8323_v37, 8  ;;  %8642 = vxpose.xlu0.b32.start [1/16] (narrow) %v8405_v18, 8 }
 0x6fc   : > { %v8328_v62 = vpop.trf.xlu1  ;;  %v8410_v4 = vpop.trf.xlu0 }
 0x6fd   : > { %8607 = vxpose.xlu1.b32.cont [2/16] (narrow) %v8328_v62, 8  ;;  %8644 = vxpose.xlu0.b32.cont [2/16] (narrow) %v8410_v4, 8 }
 0x700   : > { %v8333_v50 = vpop.trf.xlu1  ;;  %v8415_v54 = vpop.trf.xlu0 }
 0x701   : > { %8609 = vxpose.xlu1.b32.cont [3/16] (narrow) %v8333_v50, 8  ;;  %8646 = vxpose.xlu0.b32.cont [3/16] (narrow) %v8415_v54, 8  ;;  %v9393_v54 = vld [vmem:[%s9509_s2] sm:$0xff]  }
 0x704   : > { %v8338_v27 = vpop.trf.xlu1  ;;  %v8420_v13 = vpop.trf.xlu0 }
 0x705   : > { %8611 = vxpose.xlu1.b32.cont [4/16] (narrow) %v8338_v27, 8  ;;  %8648 = vxpose.xlu0.b32.cont [4/16] (narrow) %v8420_v13, 8  ;;  %v4647_v27 = vld [vmem:[%s9510_s3] sm:$0xff] }
 0x708   : > { %v8343_v23 = vpop.trf.xlu1  ;;  %v8425_v61 = vpop.trf.xlu0 }
 0x709   : > { %8613 = vxpose.xlu1.b32.cont [5/16] (narrow) %v8343_v23, 8  ;;  %8650 = vxpose.xlu0.b32.cont [5/16] (narrow) %v8425_v61, 8 }
 0x70c   : > { %v8348_v42 = vpop.trf.xlu1  ;;  %v8430_v46 = vpop.trf.xlu0 }
 0x70d   : > { %8615 = vxpose.xlu1.b32.cont [6/16] (narrow) %v8348_v42, 8  ;;  %8652 = vxpose.xlu0.b32.cont [6/16] (narrow) %v8430_v46, 8 }
 0x710   : > { %v8353_v11 = vpop.trf.xlu1  ;;  %v8435_v39 = vpop.trf.xlu0 }
 0x711   : > { %8617 = vxpose.xlu1.b32.cont [7/16] (narrow) %v8353_v11, 8  ;;  %8654 = vxpose.xlu0.b32.cont [7/16] (narrow) %v8435_v39, 8 }
 0x714   : > { %v8358_v9 = vpop.trf.xlu1  ;;  %v8440_v45 = vpop.trf.xlu0 }
 0x715   : > { %8619 = vxpose.xlu1.b32.cont [8/16] (narrow) %v8358_v9, 8  ;;  %8656 = vxpose.xlu0.b32.cont [8/16] (narrow) %v8440_v45, 8 }
 0x718   : > { %v8363_v25 = vpop.trf.xlu1  ;;  %v8445_v15 = vpop.trf.xlu0 }
 0x719   : > { %8621 = vxpose.xlu1.b32.cont [9/16] (narrow) %v8363_v25, 8  ;;  %8658 = vxpose.xlu0.b32.cont [9/16] (narrow) %v8445_v15, 8 }
 0x71c   : > { %v8368_v38 = vpop.trf.xlu1  ;;  %v8450_v34 = vpop.trf.xlu0 }
 0x71d   : > { %8623 = vxpose.xlu1.b32.cont [10/16] (narrow) %v8368_v38, 8  ;;  %8660 = vxpose.xlu0.b32.cont [10/16] (narrow) %v8450_v34, 8 }
 0x720   : > { %v8373_v52 = vpop.trf.xlu1  ;;  %v8455_v14 = vpop.trf.xlu0 }
 0x721   : > { %8625 = vxpose.xlu1.b32.cont [11/16] (narrow) %v8373_v52, 8  ;;  %8662 = vxpose.xlu0.b32.cont [11/16] (narrow) %v8455_v14, 8 }
 0x724   : > { %v8378_v2 = vpop.trf.xlu1  ;;  %v8460_v16 = vpop.trf.xlu0 }
 0x725   : > { %8627 = vxpose.xlu1.b32.cont [12/16] (narrow) %v8378_v2, 8  ;;  %8664 = vxpose.xlu0.b32.cont [12/16] (narrow) %v8460_v16, 8 }
 0x728   : > { %v8383_v28 = vpop.trf.xlu1  ;;  %v8465_v20 = vpop.trf.xlu0 }
 0x729   : > { %8629 = vxpose.xlu1.b32.cont [13/16] (narrow) %v8383_v28, 8  ;;  %8666 = vxpose.xlu0.b32.cont [13/16] (narrow) %v8465_v20, 8 }
 0x72c   : > { %v8388_v26 = vpop.trf.xlu1  ;;  %v8470_v29 = vpop.trf.xlu0 }
 0x72d   : > { %8631 = vxpose.xlu1.b32.cont [14/16] (narrow) %v8388_v26, 8  ;;  %8668 = vxpose.xlu0.b32.cont [14/16] (narrow) %v8470_v29, 8 }
 0x730   : > { %v8393_v24 = vpop.trf.xlu1  ;;  %v8475_v58 = vpop.trf.xlu0 }
 0x731   : > { %8633 = vxpose.xlu1.b32.cont [15/16] (narrow) %v8393_v24, 8  ;;  %8670 = vxpose.xlu0.b32.cont [15/16] (narrow) %v8475_v58, 8 }
 0x734   : > { %v8398_v55 = vpop.trf.xlu1  ;;  %v8480_v51 = vpop.trf.xlu0 }
 0x735   : > { %8635 = vxpose.xlu1.b32.end [16/16] (narrow) %v8398_v55, 8  ;;  %8672 = vxpose.xlu0.b32.end [16/16] (narrow) %v8480_v51, 8 }
 0x738   : > { %v8487_v53 = vpop.trf.xlu1  ;;  %v8599_v60 = vpop.trf.xlu0 }
 0x739   : > { %v8603_v31 = vunpack.i.h.bf16 %v8599_v60  ;;  %v8600_v32 = vunpack.i.l.bf16 %v8599_v60  ;;  %8679 = vxpose.xlu1.b32.start [1/16] (narrow) %v8487_v53, 8 }
 0x73b   : > { %v5310_v49 = vpack.c.bf16 %v8603_v31, %v8603_v31  ;;  %v5309_v47 = vpack.c.bf16 %v8600_v32, %v8600_v32 }
 0x73c   : > { %v8492_v41 = vpop.trf.xlu1 }
 0x73d   : > { %5242 = vmatprep.subr.msk.bf16.mxu1 %vm4808_vm0, %v5310_v49  ;;  %v4810_v37 = vsel %vm4808_vm0, %v5309_v47, 0  ;;  %8681 = vxpose.xlu1.b32.cont [2/16] (narrow) %v8492_v41, 8 }
 0x73e   : > { %4842 = vmatpush1.bf16.msra.mxu1 %v4810_v37 }
 0x73f   : > { %4843 = vmatprep.subr.bf16.mxu1 %v9351_v59 }
 0x740   : > { %v8497_v18 = vpop.trf.xlu1 }
 0x741   : > { %8683 = vxpose.xlu1.b32.cont [3/16] (narrow) %v8497_v18, 8 }
 0x742   : > { %4844 = vmatpush1.bf16.msra.mxu1 %v9353_v22 }
 0x743   : > { %4845 = vmatprep.subr.bf16.mxu1 %v9271_v63 }
 0x744   : > { %v8502_v62 = vpop.trf.xlu1 }
 0x745   : > { %8685 = vxpose.xlu1.b32.cont [4/16] (narrow) %v8502_v62, 8 }
 0x746   : > { %4846 = vmatpush1.bf16.msra.mxu1 %v9273_v3 }
 0x747   : > { %4847 = vmatprep.subr.bf16.mxu1 %v9183_v35 }
 0x748   : > { %v8507_v4 = vpop.trf.xlu1 }
 0x749   : > { %8687 = vxpose.xlu1.b32.cont [5/16] (narrow) %v8507_v4, 8 }
 0x74a   : > { %4848 = vmatpush1.bf16.msra.mxu1 %v9185_v36 }
 0x74c   : > { %v8512_v50 = vpop.trf.xlu1 }
 0x74d   : > { %5243 = vmatmul.mubr.msk.bf16.vlgmr.msra.gmra.mxu1 %vm4804_vm1, %v9393_v54  ;;  %8689 = vxpose.xlu1.b32.cont [6/16] (narrow) %v8512_v50, 8 }
 0x74e   : > { %4908 = vmatprep.mubr.bf16.mxu1 %v8928_v0 }
 0x750   : > { %v8517_v59 = vpop.trf.xlu1 }
 0x751   : > { %8691 = vxpose.xlu1.b32.cont [7/16] (narrow) %v8517_v59, 8 }
 0x754   : > { %v8522_v63 = vpop.trf.xlu1 }
 0x755   : > { %8693 = vxpose.xlu1.b32.cont [8/16] (narrow) %v8522_v63, 8 }
 0x758   : > { %v8527_v35 = vpop.trf.xlu1 }
 0x759   : > { %8695 = vxpose.xlu1.b32.cont [9/16] (narrow) %v8527_v35, 8 }
 0x75c   : > { %v8532_v3 = vpop.trf.xlu1 }
 0x75d   : > { %8697 = vxpose.xlu1.b32.cont [10/16] (narrow) %v8532_v3, 8 }
 0x75e   : > { %8715 = vset.pattern.permute.xlu0 %v8928_v0 }
 0x75f   : > { %4651 = vperm.xlu0 %8715, %v4647_v27  }
 0x760   : > { %v8537_v22 = vpop.trf.xlu1 }
 0x761   : > { %8699 = vxpose.xlu1.b32.cont [11/16] (narrow) %v8537_v22, 8 }
 0x764   : > { %v8542_v36 = vpop.trf.xlu1 }
 0x765   : > { %8701 = vxpose.xlu1.b32.cont [12/16] (narrow) %v8542_v36, 8 }
 0x768   : > { %v8547_v13 = vpop.trf.xlu1 }
 0x769   : > { %8703 = vxpose.xlu1.b32.cont [13/16] (narrow) %v8547_v13, 8 }
 0x76c   : > { %v8552_v23 = vpop.trf.xlu1 }
 0x76d   : > { %8705 = vxpose.xlu1.b32.cont [14/16] (narrow) %v8552_v23, 8 }
 0x770   : > { %v8557_v61 = vpop.trf.xlu1 }
 0x771   : > { %8707 = vxpose.xlu1.b32.cont [15/16] (narrow) %v8557_v61, 8 }
 0x774   : > { %v8562_v42 = vpop.trf.xlu1 }
 0x775   : > { %8709 = vxpose.xlu1.b32.end [16/16] (narrow) %v8562_v42, 8  ;;  %v8673_v9 = vpop.trf.xlu0 }
 0x776   : > { %v8677_v45 = vunpack.i.h.bf16 %v8673_v9  ;;  %v8674_v25 = vunpack.i.l.bf16 %v8673_v9 }
 0x778   : > { %v8636_v46 = vpop.trf.xlu1  ;;  %v5314_v34 = vpack.c.bf16 %v8677_v45, %v8677_v45  ;;  %v5313_v52 = vpack.c.bf16 %v8674_v25, %v8674_v25 }
 0x779   : > { %v8640_v11 = vunpack.i.h.bf16 %v8636_v46  ;;  %v8637_v39 = vunpack.i.l.bf16 %v8636_v46 }
 0x77a   : > { %5246 = vmatprep.subr.msk.bf16.mxu0 %vm4808_vm0, %v5314_v34  ;;  %v4822_v2 = vsel %vm4808_vm0, %v5313_v52, 0 }
 0x77b   : > { %v5312_v15 = vpack.c.bf16 %v8640_v11, %v8640_v11  ;;  %v5311_v38 = vpack.c.bf16 %v8637_v39, %v8637_v39  ;;  %4928 = vmatpush1.bf16.msra.mxu0 %v4822_v2 }
 0x77c   : > { %4929 = vmatprep.subr.bf16.mxu0 %v9372_v43 }
 0x77d   : > { %5244 = vmatprep.subr.msk.bf16.mxu1 %vm4808_vm0, %v5312_v15  ;;  %v4816_v14 = vsel %vm4808_vm0, %v5311_v38, 0 }
 0x77e   : > { %4885 = vmatpush1.bf16.msra.mxu1 %v4816_v14 }
 0x77f   : > { %4886 = vmatprep.subr.bf16.mxu1 %v9365_v30  ;;  %4930 = vmatpush1.bf16.msra.mxu0 %v9374_v44 }
 0x780   : > { %4931 = vmatprep.subr.bf16.mxu0 %v9292_v7 }
 0x782   : > { %4887 = vmatpush1.bf16.msra.mxu1 %v9367_v1 }
 0x783   : > { %4888 = vmatprep.subr.bf16.mxu1 %v9285_v19  ;;  %4932 = vmatpush1.bf16.msra.mxu0 %v9294_v8  ;;  %v4648_v19 = vld [vmem:[%s9510_s3 + $0x8] sm:$0xff] }
 0x784   : > { %4933 = vmatprep.subr.bf16.mxu0 %v9204_v56 }
 0x786   : > { %4889 = vmatpush1.bf16.msra.mxu1 %v9287_v21 }
 0x787   : > { %4890 = vmatprep.subr.bf16.mxu1 %v9197_v5  ;;  %4934 = vmatpush1.bf16.msra.mxu0 %v9206_v57 }
 0x78a   : > { %4891 = vmatpush1.bf16.msra.mxu1 %v9199_v6  ;;  %5247 = vmatmul.mubr.msk.bf16.vlgmr.msra.gmra.mxu0 %vm4804_vm1, %v9393_v54 }
 0x78d   : > { %5245 = vmatmul.mubr.msk.bf16.vlgmr.msra.gmra.mxu1 %vm4804_vm1, %v9393_v54 }
 0x78e   : > { %4994 = vmatprep.mubr.bf16.mxu1 %v8928_v0 }
 0x793   : > { %8716 = vset.pattern.permute.xlu1 %v8928_v0 }
 0x794   : > { %4656 = vperm.xlu1 %8716, %v4648_v19  }
 0x7b5   : > { %v8710_v5 = vpop.trf.xlu1 }
 0x7b6   : > { %v8714_v6 = vunpack.i.h.bf16 %v8710_v5  ;;  %v8711_v56 = vunpack.i.l.bf16 %v8710_v5 }
 0x7b8   : > { %v5316_v57 = vpack.c.bf16 %v8714_v6, %v8714_v6  ;;  %v5315_v21 = vpack.c.bf16 %v8711_v56, %v8711_v56 }
 0x7ba   : > { %5248 = vmatprep.subr.msk.bf16.mxu1 %vm4808_vm0, %v5316_v57  ;;  %v4828_v7 = vsel %vm4808_vm0, %v5315_v21, 0 }
 0x7bb   : > { %4971 = vmatpush1.bf16.msra.mxu1 %v4828_v7 }
 0x7bc   : > { %4972 = vmatprep.subr.bf16.mxu1 %v9379_v17 }
 0x7bf   : > { %4973 = vmatpush1.bf16.msra.mxu1 %v9381_v10 }
 0x7c0   : > { %4974 = vmatprep.subr.bf16.mxu1 %v9299_v48 }
 0x7c3   : > { %4975 = vmatpush1.bf16.msra.mxu1 %v9301_v40 }
 0x7c4   : > { %4976 = vmatprep.subr.bf16.mxu1 %v9211_v12 }
 0x7c7   : > { %4977 = vmatpush1.bf16.msra.mxu1 %v9213_v33 }
 0x7ca   : > { %5249 = vmatmul.mubr.msk.bf16.vlgmr.msra.gmra.mxu1 %vm4804_vm1, %v9393_v54 }
 0x7da   : > { %v4652_v0 = vpop.permute.xlu0 %4651 }
 0x80d   : > { %v4867_v8 = vpop.f32.mrf.mxu1 }
 0x80e   : > { %v4868_v30 = vadd.f32 %v4867_v8, %v4652_v0 }
 0x80f   : > { %v4869_v1 = vpop.f32.mrf.mxu1  ;;  %v4657_v48 = vpop.permute.xlu1 %4656 }
 0x810   : > { %v4870_v43 = vadd.f32 %v4869_v1, %v4652_v0  ;;  %5005 = vst [vmem:[%s9439_s11] sm:$0xff] %v4868_v30 }
 0x811   : > { %v4871_v12 = vpop.f32.mrf.mxu1 }
 0x812   : > { %v4872_v33 = vadd.f32 %v4871_v12, %v4657_v48  ;;  %5006 = vst [vmem:[%s9439_s11 + $0x8] sm:$0xff] %v4870_v43 }
 0x813   : > { %v4873_v40 = vpop.f32.mrf.mxu1 }
 0x814   : > { %5013 = vst [vmem:[%s9439_s11 + $0x40] sm:$0xff] %v4872_v33  ;;  %v4874_v44 = vadd.f32 %v4873_v40, %v4657_v48 }
 0x816   : > { %5014 = vst [vmem:[%s9439_s11 + $0x48] sm:$0xff] %v4874_v44 }
 0x84a   : > { %v4953_v16 = vpop.f32.mrf.mxu0 }
 0x84b   : > { %v4954_v20 = vadd.f32 %v4953_v16, %v4652_v0 }
 0x84c   : > { %v4955_v29 = vpop.f32.mrf.mxu0 }
 0x84d   : > { %v4910_v17 = vpop.f32.mrf.mxu1  ;;  %5009 = vst [vmem:[%s9439_s11 + $0x20] sm:$0xff] %v4954_v20  ;;  %v4956_v58 = vadd.f32 %v4955_v29, %v4652_v0 }
 0x84e   : > { %v4911_v10 = vadd.f32 %v4910_v17, %v4652_v0  ;;  %v4957_v51 = vpop.f32.mrf.mxu0 }
 0x84f   : > { %v4912_v28 = vpop.f32.mrf.mxu1  ;;  %5010 = vst [vmem:[%s9439_s11 + $0x28] sm:$0xff] %v4956_v58  ;;  %v4958_v60 = vadd.f32 %v4957_v51, %v4657_v48 }
 0x850   : > { %5007 = vst [vmem:[%s9439_s11 + $0x10] sm:$0xff] %v4911_v10  ;;  %v4913_v26 = vadd.f32 %v4912_v28, %v4652_v0  ;;  %v4959_v32 = vpop.f32.mrf.mxu0 }
 0x851   : > { %v4914_v24 = vpop.f32.mrf.mxu1  ;;  %5017 = vst [vmem:[%s9439_s11 + $0x60] sm:$0xff] %v4958_v60  ;;  %v4960_v41 = vadd.f32 %v4959_v32, %v4657_v48 }
 0x852   : > { %5008 = vst [vmem:[%s9439_s11 + $0x18] sm:$0xff] %v4913_v26  ;;  %v4915_v55 = vadd.f32 %v4914_v24, %v4657_v48 }
 0x853   : > { %v4916_v53 = vpop.f32.mrf.mxu1  ;;  %5018 = vst [vmem:[%s9439_s11 + $0x68] sm:$0xff] %v4960_v41 }
 0x854   : > { %5015 = vst [vmem:[%s9439_s11 + $0x50] sm:$0xff] %v4915_v55  ;;  %v4917_v31 = vadd.f32 %v4916_v53, %v4657_v48 }
 0x856   : > { %5016 = vst [vmem:[%s9439_s11 + $0x58] sm:$0xff] %v4917_v31 }
 0x88a   : > { %v4996_v49 = vpop.f32.mrf.mxu1 }
 0x88b   : > { %v4997_v47 = vadd.f32 %v4996_v49, %v4652_v0 }
 0x88c   : > { %v4998_v37 = vpop.f32.mrf.mxu1 }
 0x88d   : > { %5011 = vst [vmem:[%s9439_s11 + $0x30] sm:$0xff] %v4997_v47  ;;  %v4999_v18 = vadd.f32 %v4998_v37, %v4652_v0 }
 0x88e   : > { %v5000_v62 = vpop.f32.mrf.mxu1 }
 0x88f   : > { %5012 = vst [vmem:[%s9439_s11 + $0x38] sm:$0xff] %v4999_v18  ;;  %v5001_v4 = vadd.f32 %v5000_v62, %v4657_v48 }
 0x890   : > { %v5002_v50 = vpop.f32.mrf.mxu1 }
 0x891   : > { %5019 = vst [vmem:[%s9439_s11 + $0x70] sm:$0xff] %v5001_v4  ;;  %v5003_v54 = vadd.f32 %v5002_v50, %v4657_v48 }
 0x893   : > { %5020 = vst [vmem:[%s9439_s11 + $0x78] sm:$0xff] %v5003_v54 }
 0x894   : > { %8865 = shalt.err (!%p8862_p0)
}
 0x895   : > { %s8866_s23 = scalar_lea.hbm %s9460_s30, 2048  ;;  %s8870_s28 = scalar_lea.hbm %s9511_s4, 4096 }
 0x896   : > { %p8867_p5 = scmp.ne.s32.totalorder %s9460_s30, %s8866_s23  ;;  %p8871_p4 = scmp.lt.s32.totalorder %s9460_s30, %s9511_s4 }
 0x897   : > { %p8872_p6 = scmp.lt.s32.totalorder %s8870_s28, %s8866_s23 }
 0x898   : > { %p8868_p9 = pnand %p8867_p5, %p9527_p11 }
 0x899   : > { %p8873_p8 = por %p8872_p6, %p8871_p4 }
 0x89a   : > { %p8869_p1 = pneg %p8868_p9 }
 0x89c   : > { %p8874_p3 = pnand %p8873_p8, %p8869_p1 }
 0x89e   : > { %8877 = shalt.err (!%p8874_p3)
}
 0x89f   : > { %s8930_s11 = smov 1024   ;;  %s8931_s13 = smov 2048  }
 0x8a0   : > { %s8932_s20 = smov 64  }
 0x8a1   : > { %5323 = dma.vmem_to_hbm [thread:$0]  (%p9527_p11), %s9462_s14, 2048, %s9460_s30, %s5022_s19, %s8930_s11, %s8931_s13, %s8932_s20  }
 0x8a2 PF: > { %s5050_s25 = sand.u32 1, %s8908_s15   ;;  %p9528_p7 = scmp.ne.s32.totalorder %s9517_s22, 0 }
 0x8a3   : > { %p9529_p12 = scmp.ge.s32.totalorder %s8920_s18, 2  ;;  %s5051_s6 = scalar_lea.sflag [#allocation5], %s5050_s25 }
 0x8a5   : > { %p5334_p10 = pnand %p9529_p12, %p9528_p7 }
 0x8a7   : > { %p5335_p2 = pneg %p5334_p10 }
 0x8a9   : > { %8903 = dma.done.wait (%p5335_p2), %s5051_s6, 2048  }
 0x8aa   : > { %8905 = vsyncadd (%p5335_p2), %s5051_s6, 4294965248  ;;  %p18_p13 = scmp.ge.s32.totalorder %s9012_s27, 4   ;;  %s9530_s15 = smov %s8912_s16 }
 0x8ab   : > { %s9531_s16 = smov %s8916_s17  ;;  %s9532_s17 = smov %s9029_s9 }
 0x8ac   : > { %s9533_s18 = smov %s9012_s27  ;;  %20 = sbr.rel (!%p18_p13) target bundleno = 6 (0x6), region = 85 }
 0x8b1   :  { %5056 = vsyncpa [#allocation4], 1 }
 0x8b2   :  { %5058 = vsyncpa [#allocation4 + $0x1], 1 }
 0x8b3   :  { %5059 = vsyncpa [#allocation7], 1 }
 0x8b4   :  { %5060 = vsyncpa [#allocation5], 1 }
 0x8b5   :  { %5062 = vsyncpa [#allocation5 + $0x1], 1 }

</bundles_post_ra>
